<compile_context>
chip_gen: v7x
topology: tpu7x:2x2x1
jax: 0.10.0
libtpu: 0.0.40
codegen_flags: <defaults>
</compile_context>

<pallas_src>
import math

import jax
import jax.numpy as jnp
from jax import lax
from jax.experimental import pallas as pl
from jax.experimental.pallas import tpu as pltpu

# ---- small model config (consistent with the module's __init__ signature) ----
NTOKEN = 64
D_MODEL = 32
NHEAD = 2
HEAD_DIM = D_MODEL // NHEAD
D_HID = 64
NLAYERS = 2
SEQ = 8
BATCH = 2
LN_EPS = 1e-5
V_PAD = 128          # decoder output padded to a full 128-lane vreg width
NEG_INF = -1e9       # additive "masked" value (finite: exp() underflows to 0)

# The [BS, BS] block mask is packed into the D_MODEL-lane constants slab.
assert SEQ * BATCH <= D_MODEL, "mask packing assumes B*S <= d_model lanes"


def _vmem_spec():
    return pl.BlockSpec(memory_space=pltpu.MemorySpace.VMEM)


# --------------------- fused forward-pass kernel ------------------------------
def fused_forward_kernel(ids_ref, const_ref, wqkv_ref, wow2_ref, w1_ref,
                         vec_ref, dec_ref, out_ref):
    BS = ids_ref.shape[0]                       # B*S rows (seq-major: s*B + b)
    D = D_MODEL
    H, DH = NHEAD, HEAD_DIM

    # --- constants slab: [emb * sqrt(D); pe rows; batch block mask] ---
    emb = const_ref[0:NTOKEN, :]                                  # [V, D]
    pe = const_ref[NTOKEN:NTOKEN + BS, :]                         # [BS, D]
    mask = const_ref[NTOKEN + BS:NTOKEN + 2 * BS, 0:BS]           # [BS, BS]

    # --- embedding gather (one-hot @ table on the MXU) + positional encoding ---
    ids = ids_ref[...]                                            # [BS, 1] int32
    vocab_iota = lax.broadcasted_iota(jnp.int32, (BS, NTOKEN), 1)
    onehot = (vocab_iota == ids).astype(jnp.float32)              # [BS, V]
    x = jnp.dot(onehot, emb, preferred_element_type=jnp.float32) + pe   # [BS, D]
    # TODO(synk): PositionalEncoding / encoder-layer dropout are identity (eval).

    for l in range(NLAYERS):                                      # static unroll
        vec = vec_ref[l]                          # [8, 128] — one vreg of small params
        bqkv = vec[0:1, 0:3 * D]
        bo = vec[1:2, 0:D]
        b1 = vec[2:3, 0:D_HID]
        b2 = vec[3:4, 0:D]
        ln1w, ln1b = vec[4:5, 0:D], vec[5:6, 0:D]
        ln2w, ln2b = vec[6:7, 0:D], vec[7:8, 0:D]

        # ---- fused QKV projection (1/sqrt(head_dim) folded into Q at init) ----
        qkv = jnp.dot(x, wqkv_ref[l],
                      preferred_element_type=jnp.float32) + bqkv          # [BS, 3D]

        # ---- multi-head attention: flat 2-D matmuls + additive block mask ----
        head_outs = []
        for h in range(H):
            qh = qkv[:, 0 * D + h * DH: 0 * D + (h + 1) * DH]             # [BS, DH]
            kh = qkv[:, 1 * D + h * DH: 1 * D + (h + 1) * DH]
            vh = qkv[:, 2 * D + h * DH: 2 * D + (h + 1) * DH]
            s = lax.dot_general(qh, kh, (((1,), (1,)), ((), ())),
                                preferred_element_type=jnp.float32)       # q @ k.T
            s = s + mask                                                   # [BS, BS]
            p = jnp.exp(s)          # scores bounded; masked entries exp(-1e9) -> 0
            p = p * pl.reciprocal(jnp.sum(p, axis=-1, keepdims=True), approx=True)
            head_outs.append(jnp.dot(p, vh, preferred_element_type=jnp.float32))
        attn = jnp.concatenate(head_outs, axis=-1)                         # [BS, D]

        # ---- output projection + residual + LayerNorm1 (fused statistics) ----
        wow2 = wow2_ref[l]                        # [D + D_HID, D]
        wo, w2 = wow2[0:D, :], wow2[D:D + D_HID, :]
        y = x + jnp.dot(attn, wo, preferred_element_type=jnp.float32) + bo
        mu = jnp.sum(y, axis=-1, keepdims=True) * (1.0 / D)
        ex2 = jnp.sum(y * y, axis=-1, keepdims=True) * (1.0 / D)
        y = (y - mu) * lax.rsqrt(ex2 - mu * mu + LN_EPS) * ln1w + ln1b

        # ---- feed-forward (ReLU) + residual + LayerNorm2 (fused statistics) ----
        h1 = jnp.dot(y, w1_ref[l], preferred_element_type=jnp.float32) + b1
        h1 = jnp.maximum(h1, 0.0)
        z = y + jnp.dot(h1, w2, preferred_element_type=jnp.float32) + b2
        mu2 = jnp.sum(z, axis=-1, keepdims=True) * (1.0 / D)
        ex22 = jnp.sum(z * z, axis=-1, keepdims=True) * (1.0 / D)
        x = (z - mu2) * lax.rsqrt(ex22 - mu2 * mu2 + LN_EPS) * ln2w + ln2b

    # ---- decoder linear (output padded to 128 lanes -> unmasked full store) ----
    dec_w = dec_ref[0:D, :]                       # [D, 128]
    dec_b = dec_ref[D:D + 1, :]                   # [1, 128]
    out_ref[...] = jnp.dot(x, dec_w, preferred_element_type=jnp.float32) + dec_b


# ------------------------------- glue -----------------------------------------
def positional_encoding(max_len, d_model):
    pos = jnp.arange(max_len, dtype=jnp.float32)[:, None]
    div = jnp.exp(jnp.arange(0, d_model, 2, dtype=jnp.float32)
                  * (-math.log(10000.0) / d_model))
    pe = jnp.zeros((max_len, d_model), jnp.float32)
    pe = pe.at[:, 0::2].set(jnp.sin(pos * div))
    pe = pe.at[:, 1::2].set(jnp.cos(pos * div))
    return pe


def init_params(key):
    def u(k, shape):
        return jax.random.uniform(k, shape, jnp.float32, -0.1, 0.1)

    D = D_MODEL
    BS = SEQ * BATCH
    keys = jax.random.split(key, 2 + NLAYERS)

    # constants slab: [emb * sqrt(d_model); pe rows (seq-major); batch block mask]
    emb = u(keys[0], (NTOKEN, D)) * jnp.float32(math.sqrt(D_MODEL))
    pe_rows = jnp.repeat(positional_encoding(SEQ, D), BATCH, axis=0)   # row = s*B + b
    bidx = jnp.arange(BS, dtype=jnp.int32) % BATCH
    block = jnp.where(bidx[:, None] == bidx[None, :], 0.0, NEG_INF).astype(jnp.float32)
    mask_pad = jnp.zeros((BS, D), jnp.float32).at[:, :BS].set(block)
    const = jnp.concatenate([emb, pe_rows, mask_pad], axis=0)          # [V+2*BS, D]

    # decoder slab: rows 0:D weight (lane-padded), row D bias (zero-init)
    dec = jnp.zeros((D + 8, V_PAD), jnp.float32)
    dec = dec.at[:D, :NTOKEN].set(u(keys[1], (D, NTOKEN)))

    wqkv_l, wow2_l, w1_l, vec_l = [], [], [], []
    inv_sqrt_dh = 1.0 / math.sqrt(HEAD_DIM)
    for l in range(NLAYERS):
        lk = jax.random.split(keys[2 + l], 8)
        wqkv = u(lk[0], (D, 3 * D))
        bqkv = u(lk[1], (3 * D,))
        # fold the 1/sqrt(head_dim) attention scale into the Q projection
        wqkv = wqkv.at[:, :D].multiply(inv_sqrt_dh)
        bqkv = bqkv.at[:D].multiply(inv_sqrt_dh)
        wo, bo = u(lk[2], (D, D)), u(lk[3], (D,))
        w1, b1 = u(lk[4], (D, D_HID)), u(lk[5], (D_HID,))
        w2, b2 = u(lk[6], (D_HID, D)), u(lk[7], (D,))

        vec = jnp.zeros((8, 128), jnp.float32)    # packed small per-layer vectors
        vec = vec.at[0, :3 * D].set(bqkv)
        vec = vec.at[1, :D].set(bo)
        vec = vec.at[2, :D_HID].set(b1)
        vec = vec.at[3, :D].set(b2)
        vec = vec.at[4, :D].set(1.0)              # ln1 weight (ln1 bias = row 5 = 0)
        vec = vec.at[6, :D].set(1.0)              # ln2 weight (ln2 bias = row 7 = 0)

        wqkv_l.append(wqkv)
        wow2_l.append(jnp.concatenate([wo, w2], axis=0))   # [D + D_HID, D]
        w1_l.append(w1)
        vec_l.append(vec)

    return {
        "const": const,
        "dec": dec,
        "wqkv": jnp.stack(wqkv_l),   # [L, D, 3D]
        "wow2": jnp.stack(wow2_l),   # [L, D + D_HID, D]
        "w1": jnp.stack(w1_l),       # [L, D, D_HID]
        "vec": jnp.stack(vec_l),     # [L, 8, 128]
    }


def transformer_forward(params, src, src_mask=None):
    """src: [S, B] int32 token ids -> [S, B, NTOKEN] float32 logits."""
    S, B = src.shape
    BS = S * B
    assert S == SEQ and B == BATCH, "params were packed for (SEQ, BATCH)"

    ids = src.reshape(BS, 1).astype(jnp.int32)          # seq-major rows: s*B + b
    const = params["const"]
    if src_mask is not None:
        # additive float [S, S] mask (PyTorch-style boolean masks not supported here)
        big = jnp.repeat(jnp.repeat(src_mask.astype(jnp.float32), B, axis=0), B, axis=1)
        const = const.at[NTOKEN + BS:, :BS].add(big)

    out_pad = pl.pallas_call(
        fused_forward_kernel,
        out_shape=jax.ShapeDtypeStruct((BS, V_PAD), jnp.float32),
        in_specs=[_vmem_spec() for _ in range(7)],
        out_specs=_vmem_spec(),
    )(ids, const, params["wqkv"], params["wow2"], params["w1"],
      params["vec"], params["dec"])

    # Strip lane padding; seq-major rows reshape directly to [S, B, NTOKEN].
    return out_pad[:, :NTOKEN].reshape(S, B, NTOKEN)


if __name__ == "__main__":
    key = jax.random.PRNGKey(0)
    pkey, dkey = jax.random.split(key)
    params = init_params(pkey)
    src = jax.random.randint(dkey, (SEQ, BATCH), 0, NTOKEN, dtype=jnp.int32)

    fwd = jax.jit(transformer_forward)
    out = jax.block_until_ready(fwd(params, src))

    assert out.shape == (SEQ, BATCH, NTOKEN), out.shape
    assert bool(jnp.all(jnp.isfinite(out)))
    print("KERNEL_OK")
</pallas_src>

<mosaic_0001>
module attributes {stable_mosaic.version = 11 : i64} {
  func.func @fused_forward_kernel(%arg0: memref<16x1xi32, #tpu.memory_space<vmem>>, %arg1: memref<96x32xf32, #tpu.memory_space<vmem>>, %arg2: memref<2x32x96xf32, #tpu.memory_space<vmem>>, %arg3: memref<2x96x32xf32, #tpu.memory_space<vmem>>, %arg4: memref<2x32x64xf32, #tpu.memory_space<vmem>>, %arg5: memref<2x8x128xf32, #tpu.memory_space<vmem>>, %arg6: memref<40x128xf32, #tpu.memory_space<vmem>>, %arg7: memref<16x128xf32, #tpu.memory_space<vmem>>) attributes {dimension_semantics = [], scalar_prefetch = 0 : i64, scratch_operands = 0 : i64, tpu.core_type = #tpu.core_type<tc>} {
    %c0 = arith.constant 0 : index
    %c0_0 = arith.constant 0 : index
    %0 = vector.load %arg1[%c0, %c0_0] : memref<96x32xf32, #tpu.memory_space<vmem>>, vector<64x32xf32>
    %c64 = arith.constant 64 : index
    %c0_1 = arith.constant 0 : index
    %1 = vector.load %arg1[%c64, %c0_1] : memref<96x32xf32, #tpu.memory_space<vmem>>, vector<16x32xf32>
    %c80 = arith.constant 80 : index
    %c0_2 = arith.constant 0 : index
    %2 = vector.load %arg1[%c80, %c0_2] : memref<96x32xf32, #tpu.memory_space<vmem>>, vector<16x16xf32>
    %c0_3 = arith.constant 0 : index
    %c0_4 = arith.constant 0 : index
    %3 = vector.load %arg0[%c0_3, %c0_4] : memref<16x1xi32, #tpu.memory_space<vmem>>, vector<16x1xi32>
    %4 = tpu.iota {dimensions = array<i32: 1>} : vector<16x64xi32>
    %5 = vector.broadcast %3 : vector<16x1xi32> to vector<16x64xi32>
    %6 = arith.cmpi eq, %4, %5 : vector<16x64xi32>
    %7 = arith.extui %6 : vector<16x64xi1> to vector<16x64xi32>
    %8 = arith.sitofp %7 : vector<16x64xi32> to vector<16x64xf32>
    %cst = arith.constant dense<0.000000e+00> : vector<16x32xf32>
    %9 = tpu.matmul %8, %0, %cst {dimension_numbers = #tpu.dot_dimension_numbers<[1], [0], [0], [1], [0, 0, 1, 1], [], []>} : vector<16x64xf32>, vector<64x32xf32>, vector<16x32xf32> -> vector<16x32xf32>
    %10 = arith.addf %9, %1 : vector<16x32xf32>
    %c0_5 = arith.constant 0 : index
    %c0_6 = arith.constant 0 : index
    %c0_7 = arith.constant 0 : index
    %11 = vector.load %arg5[%c0_5, %c0_6, %c0_7] : memref<2x8x128xf32, #tpu.memory_space<vmem>>, vector<1x8x128xf32>
    %12 = vector.shape_cast %11 : vector<1x8x128xf32> to vector<8x128xf32>
    %13 = vector.extract_strided_slice %12 {offsets = [0, 0], sizes = [1, 96], strides = [1, 1]} : vector<8x128xf32> to vector<1x96xf32>
    %14 = vector.extract_strided_slice %12 {offsets = [1, 0], sizes = [1, 32], strides = [1, 1]} : vector<8x128xf32> to vector<1x32xf32>
    %15 = vector.extract_strided_slice %12 {offsets = [2, 0], sizes = [1, 64], strides = [1, 1]} : vector<8x128xf32> to vector<1x64xf32>
    %16 = vector.extract_strided_slice %12 {offsets = [3, 0], sizes = [1, 32], strides = [1, 1]} : vector<8x128xf32> to vector<1x32xf32>
    %17 = vector.extract_strided_slice %12 {offsets = [4, 0], sizes = [1, 32], strides = [1, 1]} : vector<8x128xf32> to vector<1x32xf32>
    %18 = vector.extract_strided_slice %12 {offsets = [5, 0], sizes = [1, 32], strides = [1, 1]} : vector<8x128xf32> to vector<1x32xf32>
    %19 = vector.extract_strided_slice %12 {offsets = [6, 0], sizes = [1, 32], strides = [1, 1]} : vector<8x128xf32> to vector<1x32xf32>
    %20 = vector.extract_strided_slice %12 {offsets = [7, 0], sizes = [1, 32], strides = [1, 1]} : vector<8x128xf32> to vector<1x32xf32>
    %c0_8 = arith.constant 0 : index
    %c0_9 = arith.constant 0 : index
    %c0_10 = arith.constant 0 : index
    %21 = vector.load %arg2[%c0_8, %c0_9, %c0_10] : memref<2x32x96xf32, #tpu.memory_space<vmem>>, vector<1x32x96xf32>
    %22 = vector.shape_cast %21 : vector<1x32x96xf32> to vector<32x96xf32>
    %cst_11 = arith.constant dense<0.000000e+00> : vector<16x96xf32>
    %23 = tpu.matmul %10, %22, %cst_11 {dimension_numbers = #tpu.dot_dimension_numbers<[1], [0], [0], [1], [0, 0, 1, 1], [], []>} : vector<16x32xf32>, vector<32x96xf32>, vector<16x96xf32> -> vector<16x96xf32>
    %24 = vector.broadcast %13 : vector<1x96xf32> to vector<16x96xf32>
    %25 = arith.addf %23, %24 : vector<16x96xf32>
    %26 = vector.extract_strided_slice %25 {offsets = [0, 0], sizes = [16, 16], strides = [1, 1]} : vector<16x96xf32> to vector<16x16xf32>
    %27 = vector.extract_strided_slice %25 {offsets = [0, 32], sizes = [16, 16], strides = [1, 1]} : vector<16x96xf32> to vector<16x16xf32>
    %28 = vector.extract_strided_slice %25 {offsets = [0, 64], sizes = [16, 16], strides = [1, 1]} : vector<16x96xf32> to vector<16x16xf32>
    %cst_12 = arith.constant dense<0.000000e+00> : vector<16x16xf32>
    %29 = tpu.matmul %26, %27, %cst_12 {dimension_numbers = #tpu.dot_dimension_numbers<[1], [1], [0], [0], [0, 0, 1, 0], [], []>} : vector<16x16xf32>, vector<16x16xf32>, vector<16x16xf32> -> vector<16x16xf32>
    %30 = arith.addf %29, %2 : vector<16x16xf32>
    %31 = math.exp %30 : vector<16x16xf32>
    %cst_13 = arith.constant dense<0.000000e+00> : vector<16xf32>
    %32 = vector.multi_reduction <add>, %31, %cst_13 [1] : vector<16x16xf32> to vector<16xf32>
    %33 = vector.shape_cast %32 : vector<16xf32> to vector<16x1xf32>
    %34 = tpu.reciprocal %33 {approx = true} : vector<16x1xf32> -> vector<16x1xf32>
    %35 = vector.broadcast %34 : vector<16x1xf32> to vector<16x16xf32>
    %36 = arith.mulf %31, %35 : vector<16x16xf32>
    %cst_14 = arith.constant dense<0.000000e+00> : vector<16x16xf32>
    %37 = tpu.matmul %36, %28, %cst_14 {dimension_numbers = #tpu.dot_dimension_numbers<[1], [0], [0], [1], [0, 0, 1, 1], [], []>} : vector<16x16xf32>, vector<16x16xf32>, vector<16x16xf32> -> vector<16x16xf32>
    %38 = vector.extract_strided_slice %25 {offsets = [0, 16], sizes = [16, 16], strides = [1, 1]} : vector<16x96xf32> to vector<16x16xf32>
    %39 = vector.extract_strided_slice %25 {offsets = [0, 48], sizes = [16, 16], strides = [1, 1]} : vector<16x96xf32> to vector<16x16xf32>
    %40 = vector.extract_strided_slice %25 {offsets = [0, 80], sizes = [16, 16], strides = [1, 1]} : vector<16x96xf32> to vector<16x16xf32>
    %cst_15 = arith.constant dense<0.000000e+00> : vector<16x16xf32>
    %41 = tpu.matmul %38, %39, %cst_15 {dimension_numbers = #tpu.dot_dimension_numbers<[1], [1], [0], [0], [0, 0, 1, 0], [], []>} : vector<16x16xf32>, vector<16x16xf32>, vector<16x16xf32> -> vector<16x16xf32>
    %42 = arith.addf %41, %2 : vector<16x16xf32>
    %43 = math.exp %42 : vector<16x16xf32>
    %cst_16 = arith.constant dense<0.000000e+00> : vector<16xf32>
    %44 = vector.multi_reduction <add>, %43, %cst_16 [1] : vector<16x16xf32> to vector<16xf32>
    %45 = vector.shape_cast %44 : vector<16xf32> to vector<16x1xf32>
    %46 = tpu.reciprocal %45 {approx = true} : vector<16x1xf32> -> vector<16x1xf32>
    %47 = vector.broadcast %46 : vector<16x1xf32> to vector<16x16xf32>
    %48 = arith.mulf %43, %47 : vector<16x16xf32>
    %cst_17 = arith.constant dense<0.000000e+00> : vector<16x16xf32>
    %49 = tpu.matmul %48, %40, %cst_17 {dimension_numbers = #tpu.dot_dimension_numbers<[1], [0], [0], [1], [0, 0, 1, 1], [], []>} : vector<16x16xf32>, vector<16x16xf32>, vector<16x16xf32> -> vector<16x16xf32>
    %50 = tpu.concatenate %37, %49 in 1 : vector<16x16xf32>, vector<16x16xf32> -> vector<16x32xf32>
    %c0_18 = arith.constant 0 : index
    %c0_19 = arith.constant 0 : index
    %c0_20 = arith.constant 0 : index
    %51 = vector.load %arg3[%c0_18, %c0_19, %c0_20] : memref<2x96x32xf32, #tpu.memory_space<vmem>>, vector<1x96x32xf32>
    %52 = vector.shape_cast %51 : vector<1x96x32xf32> to vector<96x32xf32>
    %53 = vector.extract_strided_slice %52 {offsets = [0, 0], sizes = [32, 32], strides = [1, 1]} : vector<96x32xf32> to vector<32x32xf32>
    %54 = vector.extract_strided_slice %52 {offsets = [32, 0], sizes = [64, 32], strides = [1, 1]} : vector<96x32xf32> to vector<64x32xf32>
    %cst_21 = arith.constant dense<0.000000e+00> : vector<16x32xf32>
    %55 = tpu.matmul %50, %53, %cst_21 {dimension_numbers = #tpu.dot_dimension_numbers<[1], [0], [0], [1], [0, 0, 1, 1], [], []>} : vector<16x32xf32>, vector<32x32xf32>, vector<16x32xf32> -> vector<16x32xf32>
    %56 = arith.addf %10, %55 : vector<16x32xf32>
    %57 = vector.broadcast %14 : vector<1x32xf32> to vector<16x32xf32>
    %58 = arith.addf %56, %57 : vector<16x32xf32>
    %cst_22 = arith.constant dense<0.000000e+00> : vector<16xf32>
    %59 = vector.multi_reduction <add>, %58, %cst_22 [1] : vector<16x32xf32> to vector<16xf32>
    %60 = vector.shape_cast %59 : vector<16xf32> to vector<16x1xf32>
    %cst_23 = arith.constant 3.125000e-02 : f32
    %61 = vector.broadcast %cst_23 : f32 to vector<16x1xf32>
    %62 = arith.mulf %60, %61 : vector<16x1xf32>
    %63 = arith.mulf %58, %58 : vector<16x32xf32>
    %cst_24 = arith.constant dense<0.000000e+00> : vector<16xf32>
    %64 = vector.multi_reduction <add>, %63, %cst_24 [1] : vector<16x32xf32> to vector<16xf32>
    %65 = vector.shape_cast %64 : vector<16xf32> to vector<16x1xf32>
    %cst_25 = arith.constant 3.125000e-02 : f32
    %66 = vector.broadcast %cst_25 : f32 to vector<16x1xf32>
    %67 = arith.mulf %65, %66 : vector<16x1xf32>
    %68 = vector.broadcast %62 : vector<16x1xf32> to vector<16x32xf32>
    %69 = arith.subf %58, %68 : vector<16x32xf32>
    %70 = arith.mulf %62, %62 : vector<16x1xf32>
    %71 = arith.subf %67, %70 : vector<16x1xf32>
    %cst_26 = arith.constant 9.99999974E-6 : f32
    %72 = vector.broadcast %cst_26 : f32 to vector<16x1xf32>
    %73 = arith.addf %71, %72 : vector<16x1xf32>
    %74 = math.rsqrt %73 : vector<16x1xf32>
    %75 = vector.broadcast %74 : vector<16x1xf32> to vector<16x32xf32>
    %76 = arith.mulf %69, %75 : vector<16x32xf32>
    %77 = vector.broadcast %17 : vector<1x32xf32> to vector<16x32xf32>
    %78 = arith.mulf %76, %77 : vector<16x32xf32>
    %79 = vector.broadcast %18 : vector<1x32xf32> to vector<16x32xf32>
    %80 = arith.addf %78, %79 : vector<16x32xf32>
    %c0_27 = arith.constant 0 : index
    %c0_28 = arith.constant 0 : index
    %c0_29 = arith.constant 0 : index
    %81 = vector.load %arg4[%c0_27, %c0_28, %c0_29] : memref<2x32x64xf32, #tpu.memory_space<vmem>>, vector<1x32x64xf32>
    %82 = vector.shape_cast %81 : vector<1x32x64xf32> to vector<32x64xf32>
    %cst_30 = arith.constant dense<0.000000e+00> : vector<16x64xf32>
    %83 = tpu.matmul %80, %82, %cst_30 {dimension_numbers = #tpu.dot_dimension_numbers<[1], [0], [0], [1], [0, 0, 1, 1], [], []>} : vector<16x32xf32>, vector<32x64xf32>, vector<16x64xf32> -> vector<16x64xf32>
    %84 = vector.broadcast %15 : vector<1x64xf32> to vector<16x64xf32>
    %85 = arith.addf %83, %84 : vector<16x64xf32>
    %cst_31 = arith.constant 0.000000e+00 : f32
    %86 = vector.broadcast %cst_31 : f32 to vector<16x64xf32>
    %87 = arith.maximumf %85, %86 : vector<16x64xf32>
    %cst_32 = arith.constant dense<0.000000e+00> : vector<16x32xf32>
    %88 = tpu.matmul %87, %54, %cst_32 {dimension_numbers = #tpu.dot_dimension_numbers<[1], [0], [0], [1], [0, 0, 1, 1], [], []>} : vector<16x64xf32>, vector<64x32xf32>, vector<16x32xf32> -> vector<16x32xf32>
    %89 = arith.addf %80, %88 : vector<16x32xf32>
    %90 = vector.broadcast %16 : vector<1x32xf32> to vector<16x32xf32>
    %91 = arith.addf %89, %90 : vector<16x32xf32>
    %cst_33 = arith.constant dense<0.000000e+00> : vector<16xf32>
    %92 = vector.multi_reduction <add>, %91, %cst_33 [1] : vector<16x32xf32> to vector<16xf32>
    %93 = vector.shape_cast %92 : vector<16xf32> to vector<16x1xf32>
    %cst_34 = arith.constant 3.125000e-02 : f32
    %94 = vector.broadcast %cst_34 : f32 to vector<16x1xf32>
    %95 = arith.mulf %93, %94 : vector<16x1xf32>
    %96 = arith.mulf %91, %91 : vector<16x32xf32>
    %cst_35 = arith.constant dense<0.000000e+00> : vector<16xf32>
    %97 = vector.multi_reduction <add>, %96, %cst_35 [1] : vector<16x32xf32> to vector<16xf32>
    %98 = vector.shape_cast %97 : vector<16xf32> to vector<16x1xf32>
    %cst_36 = arith.constant 3.125000e-02 : f32
    %99 = vector.broadcast %cst_36 : f32 to vector<16x1xf32>
    %100 = arith.mulf %98, %99 : vector<16x1xf32>
    %101 = vector.broadcast %95 : vector<16x1xf32> to vector<16x32xf32>
    %102 = arith.subf %91, %101 : vector<16x32xf32>
    %103 = arith.mulf %95, %95 : vector<16x1xf32>
    %104 = arith.subf %100, %103 : vector<16x1xf32>
    %cst_37 = arith.constant 9.99999974E-6 : f32
    %105 = vector.broadcast %cst_37 : f32 to vector<16x1xf32>
    %106 = arith.addf %104, %105 : vector<16x1xf32>
    %107 = math.rsqrt %106 : vector<16x1xf32>
    %108 = vector.broadcast %107 : vector<16x1xf32> to vector<16x32xf32>
    %109 = arith.mulf %102, %108 : vector<16x32xf32>
    %110 = vector.broadcast %19 : vector<1x32xf32> to vector<16x32xf32>
    %111 = arith.mulf %109, %110 : vector<16x32xf32>
    %112 = vector.broadcast %20 : vector<1x32xf32> to vector<16x32xf32>
    %113 = arith.addf %111, %112 : vector<16x32xf32>
    %c1 = arith.constant 1 : index
    %c0_38 = arith.constant 0 : index
    %c0_39 = arith.constant 0 : index
    %114 = vector.load %arg5[%c1, %c0_38, %c0_39] : memref<2x8x128xf32, #tpu.memory_space<vmem>>, vector<1x8x128xf32>
    %115 = vector.shape_cast %114 : vector<1x8x128xf32> to vector<8x128xf32>
    %116 = vector.extract_strided_slice %115 {offsets = [0, 0], sizes = [1, 96], strides = [1, 1]} : vector<8x128xf32> to vector<1x96xf32>
    %117 = vector.extract_strided_slice %115 {offsets = [1, 0], sizes = [1, 32], strides = [1, 1]} : vector<8x128xf32> to vector<1x32xf32>
    %118 = vector.extract_strided_slice %115 {offsets = [2, 0], sizes = [1, 64], strides = [1, 1]} : vector<8x128xf32> to vector<1x64xf32>
    %119 = vector.extract_strided_slice %115 {offsets = [3, 0], sizes = [1, 32], strides = [1, 1]} : vector<8x128xf32> to vector<1x32xf32>
    %120 = vector.extract_strided_slice %115 {offsets = [4, 0], sizes = [1, 32], strides = [1, 1]} : vector<8x128xf32> to vector<1x32xf32>
    %121 = vector.extract_strided_slice %115 {offsets = [5, 0], sizes = [1, 32], strides = [1, 1]} : vector<8x128xf32> to vector<1x32xf32>
    %122 = vector.extract_strided_slice %115 {offsets = [6, 0], sizes = [1, 32], strides = [1, 1]} : vector<8x128xf32> to vector<1x32xf32>
    %123 = vector.extract_strided_slice %115 {offsets = [7, 0], sizes = [1, 32], strides = [1, 1]} : vector<8x128xf32> to vector<1x32xf32>
    %c1_40 = arith.constant 1 : index
    %c0_41 = arith.constant 0 : index
    %c0_42 = arith.constant 0 : index
    %124 = vector.load %arg2[%c1_40, %c0_41, %c0_42] : memref<2x32x96xf32, #tpu.memory_space<vmem>>, vector<1x32x96xf32>
    %125 = vector.shape_cast %124 : vector<1x32x96xf32> to vector<32x96xf32>
    %cst_43 = arith.constant dense<0.000000e+00> : vector<16x96xf32>
    %126 = tpu.matmul %113, %125, %cst_43 {dimension_numbers = #tpu.dot_dimension_numbers<[1], [0], [0], [1], [0, 0, 1, 1], [], []>} : vector<16x32xf32>, vector<32x96xf32>, vector<16x96xf32> -> vector<16x96xf32>
    %127 = vector.broadcast %116 : vector<1x96xf32> to vector<16x96xf32>
    %128 = arith.addf %126, %127 : vector<16x96xf32>
    %129 = vector.extract_strided_slice %128 {offsets = [0, 0], sizes = [16, 16], strides = [1, 1]} : vector<16x96xf32> to vector<16x16xf32>
    %130 = vector.extract_strided_slice %128 {offsets = [0, 32], sizes = [16, 16], strides = [1, 1]} : vector<16x96xf32> to vector<16x16xf32>
    %131 = vector.extract_strided_slice %128 {offsets = [0, 64], sizes = [16, 16], strides = [1, 1]} : vector<16x96xf32> to vector<16x16xf32>
    %cst_44 = arith.constant dense<0.000000e+00> : vector<16x16xf32>
    %132 = tpu.matmul %129, %130, %cst_44 {dimension_numbers = #tpu.dot_dimension_numbers<[1], [1], [0], [0], [0, 0, 1, 0], [], []>} : vector<16x16xf32>, vector<16x16xf32>, vector<16x16xf32> -> vector<16x16xf32>
    %133 = arith.addf %132, %2 : vector<16x16xf32>
    %134 = math.exp %133 : vector<16x16xf32>
    %cst_45 = arith.constant dense<0.000000e+00> : vector<16xf32>
    %135 = vector.multi_reduction <add>, %134, %cst_45 [1] : vector<16x16xf32> to vector<16xf32>
    %136 = vector.shape_cast %135 : vector<16xf32> to vector<16x1xf32>
    %137 = tpu.reciprocal %136 {approx = true} : vector<16x1xf32> -> vector<16x1xf32>
    %138 = vector.broadcast %137 : vector<16x1xf32> to vector<16x16xf32>
    %139 = arith.mulf %134, %138 : vector<16x16xf32>
    %cst_46 = arith.constant dense<0.000000e+00> : vector<16x16xf32>
    %140 = tpu.matmul %139, %131, %cst_46 {dimension_numbers = #tpu.dot_dimension_numbers<[1], [0], [0], [1], [0, 0, 1, 1], [], []>} : vector<16x16xf32>, vector<16x16xf32>, vector<16x16xf32> -> vector<16x16xf32>
    %141 = vector.extract_strided_slice %128 {offsets = [0, 16], sizes = [16, 16], strides = [1, 1]} : vector<16x96xf32> to vector<16x16xf32>
    %142 = vector.extract_strided_slice %128 {offsets = [0, 48], sizes = [16, 16], strides = [1, 1]} : vector<16x96xf32> to vector<16x16xf32>
    %143 = vector.extract_strided_slice %128 {offsets = [0, 80], sizes = [16, 16], strides = [1, 1]} : vector<16x96xf32> to vector<16x16xf32>
    %cst_47 = arith.constant dense<0.000000e+00> : vector<16x16xf32>
    %144 = tpu.matmul %141, %142, %cst_47 {dimension_numbers = #tpu.dot_dimension_numbers<[1], [1], [0], [0], [0, 0, 1, 0], [], []>} : vector<16x16xf32>, vector<16x16xf32>, vector<16x16xf32> -> vector<16x16xf32>
    %145 = arith.addf %144, %2 : vector<16x16xf32>
    %146 = math.exp %145 : vector<16x16xf32>
    %cst_48 = arith.constant dense<0.000000e+00> : vector<16xf32>
    %147 = vector.multi_reduction <add>, %146, %cst_48 [1] : vector<16x16xf32> to vector<16xf32>
    %148 = vector.shape_cast %147 : vector<16xf32> to vector<16x1xf32>
    %149 = tpu.reciprocal %148 {approx = true} : vector<16x1xf32> -> vector<16x1xf32>
    %150 = vector.broadcast %149 : vector<16x1xf32> to vector<16x16xf32>
    %151 = arith.mulf %146, %150 : vector<16x16xf32>
    %cst_49 = arith.constant dense<0.000000e+00> : vector<16x16xf32>
    %152 = tpu.matmul %151, %143, %cst_49 {dimension_numbers = #tpu.dot_dimension_numbers<[1], [0], [0], [1], [0, 0, 1, 1], [], []>} : vector<16x16xf32>, vector<16x16xf32>, vector<16x16xf32> -> vector<16x16xf32>
    %153 = tpu.concatenate %140, %152 in 1 : vector<16x16xf32>, vector<16x16xf32> -> vector<16x32xf32>
    %c1_50 = arith.constant 1 : index
    %c0_51 = arith.constant 0 : index
    %c0_52 = arith.constant 0 : index
    %154 = vector.load %arg3[%c1_50, %c0_51, %c0_52] : memref<2x96x32xf32, #tpu.memory_space<vmem>>, vector<1x96x32xf32>
    %155 = vector.shape_cast %154 : vector<1x96x32xf32> to vector<96x32xf32>
    %156 = vector.extract_strided_slice %155 {offsets = [0, 0], sizes = [32, 32], strides = [1, 1]} : vector<96x32xf32> to vector<32x32xf32>
    %157 = vector.extract_strided_slice %155 {offsets = [32, 0], sizes = [64, 32], strides = [1, 1]} : vector<96x32xf32> to vector<64x32xf32>
    %cst_53 = arith.constant dense<0.000000e+00> : vector<16x32xf32>
    %158 = tpu.matmul %153, %156, %cst_53 {dimension_numbers = #tpu.dot_dimension_numbers<[1], [0], [0], [1], [0, 0, 1, 1], [], []>} : vector<16x32xf32>, vector<32x32xf32>, vector<16x32xf32> -> vector<16x32xf32>
    %159 = arith.addf %113, %158 : vector<16x32xf32>
    %160 = vector.broadcast %117 : vector<1x32xf32> to vector<16x32xf32>
    %161 = arith.addf %159, %160 : vector<16x32xf32>
    %cst_54 = arith.constant dense<0.000000e+00> : vector<16xf32>
    %162 = vector.multi_reduction <add>, %161, %cst_54 [1] : vector<16x32xf32> to vector<16xf32>
    %163 = vector.shape_cast %162 : vector<16xf32> to vector<16x1xf32>
    %cst_55 = arith.constant 3.125000e-02 : f32
    %164 = vector.broadcast %cst_55 : f32 to vector<16x1xf32>
    %165 = arith.mulf %163, %164 : vector<16x1xf32>
    %166 = arith.mulf %161, %161 : vector<16x32xf32>
    %cst_56 = arith.constant dense<0.000000e+00> : vector<16xf32>
    %167 = vector.multi_reduction <add>, %166, %cst_56 [1] : vector<16x32xf32> to vector<16xf32>
    %168 = vector.shape_cast %167 : vector<16xf32> to vector<16x1xf32>
    %cst_57 = arith.constant 3.125000e-02 : f32
    %169 = vector.broadcast %cst_57 : f32 to vector<16x1xf32>
    %170 = arith.mulf %168, %169 : vector<16x1xf32>
    %171 = vector.broadcast %165 : vector<16x1xf32> to vector<16x32xf32>
    %172 = arith.subf %161, %171 : vector<16x32xf32>
    %173 = arith.mulf %165, %165 : vector<16x1xf32>
    %174 = arith.subf %170, %173 : vector<16x1xf32>
    %cst_58 = arith.constant 9.99999974E-6 : f32
    %175 = vector.broadcast %cst_58 : f32 to vector<16x1xf32>
    %176 = arith.addf %174, %175 : vector<16x1xf32>
    %177 = math.rsqrt %176 : vector<16x1xf32>
    %178 = vector.broadcast %177 : vector<16x1xf32> to vector<16x32xf32>
    %179 = arith.mulf %172, %178 : vector<16x32xf32>
    %180 = vector.broadcast %120 : vector<1x32xf32> to vector<16x32xf32>
    %181 = arith.mulf %179, %180 : vector<16x32xf32>
    %182 = vector.broadcast %121 : vector<1x32xf32> to vector<16x32xf32>
    %183 = arith.addf %181, %182 : vector<16x32xf32>
    %c1_59 = arith.constant 1 : index
    %c0_60 = arith.constant 0 : index
    %c0_61 = arith.constant 0 : index
    %184 = vector.load %arg4[%c1_59, %c0_60, %c0_61] : memref<2x32x64xf32, #tpu.memory_space<vmem>>, vector<1x32x64xf32>
    %185 = vector.shape_cast %184 : vector<1x32x64xf32> to vector<32x64xf32>
    %cst_62 = arith.constant dense<0.000000e+00> : vector<16x64xf32>
    %186 = tpu.matmul %183, %185, %cst_62 {dimension_numbers = #tpu.dot_dimension_numbers<[1], [0], [0], [1], [0, 0, 1, 1], [], []>} : vector<16x32xf32>, vector<32x64xf32>, vector<16x64xf32> -> vector<16x64xf32>
    %187 = vector.broadcast %118 : vector<1x64xf32> to vector<16x64xf32>
    %188 = arith.addf %186, %187 : vector<16x64xf32>
    %cst_63 = arith.constant 0.000000e+00 : f32
    %189 = vector.broadcast %cst_63 : f32 to vector<16x64xf32>
    %190 = arith.maximumf %188, %189 : vector<16x64xf32>
    %cst_64 = arith.constant dense<0.000000e+00> : vector<16x32xf32>
    %191 = tpu.matmul %190, %157, %cst_64 {dimension_numbers = #tpu.dot_dimension_numbers<[1], [0], [0], [1], [0, 0, 1, 1], [], []>} : vector<16x64xf32>, vector<64x32xf32>, vector<16x32xf32> -> vector<16x32xf32>
    %192 = arith.addf %183, %191 : vector<16x32xf32>
    %193 = vector.broadcast %119 : vector<1x32xf32> to vector<16x32xf32>
    %194 = arith.addf %192, %193 : vector<16x32xf32>
    %cst_65 = arith.constant dense<0.000000e+00> : vector<16xf32>
    %195 = vector.multi_reduction <add>, %194, %cst_65 [1] : vector<16x32xf32> to vector<16xf32>
    %196 = vector.shape_cast %195 : vector<16xf32> to vector<16x1xf32>
    %cst_66 = arith.constant 3.125000e-02 : f32
    %197 = vector.broadcast %cst_66 : f32 to vector<16x1xf32>
    %198 = arith.mulf %196, %197 : vector<16x1xf32>
    %199 = arith.mulf %194, %194 : vector<16x32xf32>
    %cst_67 = arith.constant dense<0.000000e+00> : vector<16xf32>
    %200 = vector.multi_reduction <add>, %199, %cst_67 [1] : vector<16x32xf32> to vector<16xf32>
    %201 = vector.shape_cast %200 : vector<16xf32> to vector<16x1xf32>
    %cst_68 = arith.constant 3.125000e-02 : f32
    %202 = vector.broadcast %cst_68 : f32 to vector<16x1xf32>
    %203 = arith.mulf %201, %202 : vector<16x1xf32>
    %204 = vector.broadcast %198 : vector<16x1xf32> to vector<16x32xf32>
    %205 = arith.subf %194, %204 : vector<16x32xf32>
    %206 = arith.mulf %198, %198 : vector<16x1xf32>
    %207 = arith.subf %203, %206 : vector<16x1xf32>
    %cst_69 = arith.constant 9.99999974E-6 : f32
    %208 = vector.broadcast %cst_69 : f32 to vector<16x1xf32>
    %209 = arith.addf %207, %208 : vector<16x1xf32>
    %210 = math.rsqrt %209 : vector<16x1xf32>
    %211 = vector.broadcast %210 : vector<16x1xf32> to vector<16x32xf32>
    %212 = arith.mulf %205, %211 : vector<16x32xf32>
    %213 = vector.broadcast %122 : vector<1x32xf32> to vector<16x32xf32>
    %214 = arith.mulf %212, %213 : vector<16x32xf32>
    %215 = vector.broadcast %123 : vector<1x32xf32> to vector<16x32xf32>
    %216 = arith.addf %214, %215 : vector<16x32xf32>
    %c0_70 = arith.constant 0 : index
    %c0_71 = arith.constant 0 : index
    %217 = vector.load %arg6[%c0_70, %c0_71] : memref<40x128xf32, #tpu.memory_space<vmem>>, vector<32x128xf32>
    %c32 = arith.constant 32 : index
    %c0_72 = arith.constant 0 : index
    %218 = vector.load %arg6[%c32, %c0_72] : memref<40x128xf32, #tpu.memory_space<vmem>>, vector<1x128xf32>
    %cst_73 = arith.constant dense<0.000000e+00> : vector<16x128xf32>
    %219 = tpu.matmul %216, %217, %cst_73 {dimension_numbers = #tpu.dot_dimension_numbers<[1], [0], [0], [1], [0, 0, 1, 1], [], []>} : vector<16x32xf32>, vector<32x128xf32>, vector<16x128xf32> -> vector<16x128xf32>
    %220 = vector.broadcast %218 : vector<1x128xf32> to vector<16x128xf32>
    %221 = arith.addf %219, %220 : vector<16x128xf32>
    %c0_74 = arith.constant 0 : index
    %c0_75 = arith.constant 0 : index
    %222 = vector.load %arg7[%c0_74, %c0_75] : memref<16x128xf32, #tpu.memory_space<vmem>>, vector<16x128xf32>
    tpu.vector_store %arg7[%c0_74, %c0_75], %221 {strides = array<i32>} : memref<16x128xf32, #tpu.memory_space<vmem>>, vector<16x128xf32>,
    return
  }
}

</mosaic_0001>

<bundles_post_ra>
// kernel: transformer_forward.1
= control target key start
LH: loop header
LB: loop body
LE: loop exit
PB: predicated region body
PF: predicated region fallthrough
CT: control target
= control target key end

     0   :  { %v2575_v2 = vmov 0   ;;  %s3025_s0 = inlined_call_operand.vmem [shape: s32[16,1], index: 0, kind: input, shape index: {}]   ;;  %s3026_s1 = inlined_call_operand.vmem [shape: f32[96,32], index: 1, kind: input, shape index: {}]   ;;  %s3027_s2 = inlined_call_operand.vmem [shape: f32[2,32,96], index: 2, kind: input, shape index: {}]   ;;  %s3028_s3 = inlined_call_operand.vmem [shape: f32[2,96,32], index: 3, kind: input, shape index: {}]   ;;  %s3029_s4 = inlined_call_operand.vmem [shape: f32[2,32,64], index: 4, kind: input, shape index: {}]   ;;  %s3030_s5 = inlined_call_operand.vmem [shape: f32[2,8,128], index: 5, kind: input, shape index: {}]   ;;  %s3031_s6 = inlined_call_operand.vmem [shape: f32[40,128], index: 6, kind: input, shape index: {}]   ;;  %s3032_s7 = inlined_call_operand.hbm [shape: f32[16,128], index: 7, kind: output, shape index: {}]  }
   0x1   :  { %v39_v0 = vld [vmem:[%s3025_s0] sm:$0xff]  ;;  %2462 = vset.pattern.permute.xlu0 %v2575_v2  ;;  %v28_v3 = vld [vmem:[%s3026_s1 + $0x8] sm:$0xff]  ;;  %v29_v4 = vld [vmem:[%s3026_s1 + $0x10] sm:$0xff] }
   0x2   :  { %v27_v1 = vld [vmem:[%s3026_s1] sm:$0xff]  ;;  %v30_v5 = vld [vmem:[%s3026_s1 + $0x18] sm:$0xff]  ;;  %44 = vperm.xlu0 %2462, %v39_v0   ;;  %v40_v6 = vld [vmem:[%s3025_s0 + $0x8] sm:$0xff] }
   0x3   :  { %v2307_v7 = vpack.c.bf16 %v28_v3, %v27_v1  ;;  %v2311_v8 = vpack.c.bf16 %v30_v5, %v29_v4  ;;  %v31_v9 = vld [vmem:[%s3026_s1 + $0x20] sm:$0xff]  ;;  %v32_v10 = vld [vmem:[%s3026_s1 + $0x28] sm:$0xff] }
   0x4   :  { %12 = vsyncpa [#allocation3], 0  ;;  %v2315_v11 = vpack.c.bf16 %v32_v10, %v31_v9  ;;  %v33_v12 = vld [vmem:[%s3026_s1 + $0x30] sm:$0xff]  ;;  %v34_v13 = vld [vmem:[%s3026_s1 + $0x38] sm:$0xff]  ;;  %v41_v18 = vlaneseq  ;;  %vm55_vm0 = vcmask 523264   ;;  %v2576_v21 = vmov 0.0  }
   0x5   :  { %2308 = vmatprep.subr.bf16.mxu0 %v2307_v7  ;;  %v138_v14 = vld [vmem:[%s3027_s2] sm:$0xff]  ;;  %v139_v15 = vld [vmem:[%s3027_s2 + $0x8] sm:$0xff]  ;;  %v2319_v17 = vpack.c.bf16 %v34_v13, %v33_v12  ;;  %v140_v25 = vld [vmem:[%s3027_s2 + $0x10] sm:$0xff]  ;;  %vm146_vm3 = vcmask 261120   ;;  %vm234_vm4 = vcmask 130048   ;;  %s2577_s11 = smov 96  }
   0x6   :  { %2310 = vmatpush3.bf16.msra.mxu0 %v2307_v7  ;;  %47 = vperm.xlu0 %2462, %v40_v6   ;;  %v2323_v16 = vpack.c.bf16 %v139_v15, %v138_v14  ;;  %v42_v19 = vand.u32 127, %v41_v18  ;;  %v141_v26 = vld [vmem:[%s3027_s2 + $0x18] sm:$0xff]  ;;  %v35_v28 = vld [vmem:[%s3026_s1 + $0x40] sm:$0xff]  ;;  %v36_v29 = vld [vmem:[%s3026_s1 + $0x48] sm:$0xff]  ;;  %v2684_v34 = vshrl.u32 %v41_v18, 7  ;;  %s2578_s12 = smov 80  }
   0x7   :  { %2312 = vmatprep.subr.bf16.mxu0 %v2311_v8  ;;  %v2327_v27 = vpack.c.bf16 %v141_v26, %v140_v25  ;;  %v2690_v36 = vld [vmem:[%s3030_s5] sm:$0xff]  ;;  %vm2704_vm5 = vmpackc.low %vm234_vm4, %vm234_vm4  ;;  %v2716_v48 = vld [vmem:[%s3026_s1 + $0x58] sm:$0xff]  ;;  %s2580_s17 = smov 64   ;;  %s2581_s18 = smov 48  }
   0x8   :  { %2324 = vmatprep.subr.bf16.mxu1 %v2323_v16  ;;  %v144_v35 = vsub.s32 0, %v2684_v34  ;;  %v2721_v49 = vld [vmem:[%s3026_s1 + $0x50] sm:$0xff]  ;;  %s2579_s1 = smov 112   ;;  %s2582_s26 = smov 16  }
   0x9   :  { %2326 = vmatpush3.bf16.msra.mxu1 %v2323_v16  ;;  %s2583_s28 = smov [#allocation2]  }
   0xa   :  { %2314 = vmatpush3.bf16.msra.mxu0 %v2311_v8  ;;  %2328 = vmatprep.subr.bf16.mxu1 %v2327_v27  ;;  %v145_v37 = vrot.slane %v2690_v36, %v144_v35  ;;  %s1934_s29 = sshll.u32 %s2583_s28, 4  ;;  %s1935_s29 = int_to_ptr.vmem [resolvable:$true] %s1934_s29 }
   0xb   :  { %2316 = vmatprep.subr.bf16.mxu0 %v2315_v11  ;;  %s2551_s30 = scalar_lea.vmem %s1935_s29, 256  ;;  %p2556_p1 = scmp.lt.s32.totalorder %s1935_s29, %s1935_s29 }
   0xc   :  { %p2552_p0 = scmp.ne.s32.totalorder %s1935_s29, %s2551_s30  ;;  %p2557_p2 = scmp.lt.s32.totalorder %s2551_s30, %s2551_s30 }
   0xd   :  { %2330 = vmatpush3.bf16.msra.mxu1 %v2327_v27 }
   0xe   :  { %2318 = vmatpush3.bf16.msra.mxu0 %v2315_v11  ;;  %p2558_p3 = por %p2557_p2, %p2556_p1 }
   0xf   :  { %2320 = vmatprep.subr.bf16.mxu0 %v2319_v17 }
  0x10   :  { %p2559_p4 = pnand %p2558_p3, %p2552_p0 }
  0x12   :  { %2322 = vmatpush3.bf16.msra.mxu0 %v2319_v17 }
  0x81   :  { %v45_v20 = vpop.permute.xlu0 %44 }
  0x82   :  { %vm49_vm1 = vcmp.eq.s32.totalorder %v42_v19, %v45_v20 }
  0x83   :  { %v1945_v22 = vsel %vm49_vm1, 1.0, %v2576_v21 }
  0x84   :  { %2133 = vmatprep.mubr.msk.f32.mxu0 %vm55_vm0, %v1945_v22 }
  0x85   :  { %v48_v23 = vpop.permute.xlu0 %47 }
  0x86   :  { %vm50_vm2 = vcmp.eq.s32.totalorder %v42_v19, %v48_v23 }
  0x87   :  { %v1946_v24 = vsel %vm50_vm2, 1.0, %v2576_v21 }
  0x88   :  { %2134 = vmatmul.mubr.msk.f32.vlgmr.msra.gmra.mrb[0].mxu0 %vm55_vm0, %v1946_v24 }
 0x15b   :  { %v2135_v30 = vpop.f32.mrb[0].mxu0 }
 0x15c   :  { %v128_v31 = vpop.f32.mrb[1].mxu0  ;;  %v2678_v33 = vadd.f32 %v2135_v30, %v36_v29 }
 0x15d   :  { %v2676_v32 = vadd.f32 %v128_v31, %v35_v28 }
 0x15f   :  { %2144 = vmatprep.mubr.msk.f32.mxu1 %vm146_vm3, %v2676_v32 }
 0x160   :  { %2145 = vmatmul.mubr.msk.f32.vlgmr.msra.gmra.mrb[0].mxu1 %vm146_vm3, %v2678_v33 }
 0x233   :  { %v2146_v38 = vpop.f32.mrb[0].mxu1 }
 0x234   :  { %v225_v39 = vadd.f32 %v2146_v38, %v145_v37  ;;  %v219_v40 = vpop.f32.mrb[1].mxu1 }
 0x235   :  { %v220_v41 = vadd.f32 %v219_v40, %v145_v37  ;;  %v622_v40 = vld [vmem:[%s3028_s3 + $0x8] sm:$0xff] }
 0x237   :  { %2151 = vmatprep.mubr.msk.f32.mxu1 %vm234_vm4, %v220_v41  ;;  %v2696_v42 = vpack.i.bf16 %v225_v39, %v220_v41 }
 0x239   :  { %2464 = vrot.lane.b32.xlu1 %v2696_v42, %s2577_s11 }
 0x23d   :  { %2474 = vrot.lane.b32.xlu1 %v2696_v42, %s2578_s12 }
 0x2ab   :  { %v2465_v43 = vpop.permute.xlu1 %2464 }
 0x2ac   :  { %v2467_v44 = vunpack.i.h.bf16 %v2465_v43  ;;  %v2466_v45 = vunpack.i.l.bf16 %v2465_v43  ;;  %v624_v43 = vld [vmem:[%s3028_s3 + $0x18] sm:$0xff] }
 0x2ae   :  { %v2331_v47 = vpack.c.bf16 %v2467_v44, %v2466_v45 }
 0x2af   :  { %v2475_v60 = vpop.permute.xlu1 %2474 }
 0x2b0   :  { %2333 = vmatprep.subr.msk.bf16.mxu1 %vm2704_vm5, %v2331_v47  ;;  %v2477_v0 = vunpack.i.h.bf16 %v2475_v60  ;;  %v2476_v1 = vunpack.i.l.bf16 %v2475_v60 }
 0x2b1   :  { %2336 = vmatpush3.bf16.xpose.msk.msra.mxu1 %vm2704_vm5, %v2331_v47 }
 0x2b2   :  { %v2341_v5 = vpack.c.bf16 %v2477_v0, %v2476_v1 }
 0x2b8   :  { %2152 = vmatmul.mubr.msk.f32.vlgmr.msra.gmra.mrb[2].mxu1 %vm234_vm4, %v225_v39 }
 0x38b   :  { %v2153_v50 = vpop.f32.mrb[2].mxu1 }
 0x38c   :  { %v315_v51 = vadd.f32 %v2153_v50, %v2716_v48  ;;  %v309_v52 = vpop.f32.mrb[3].mxu1 }
 0x38d   :  { %v310_v53 = vadd.f32 %v309_v52, %v2721_v49 }
 0x38e   :  { %v320_v54 = vmul.f32 1.442695, %v315_v51 }
 0x38f   :  { %v318_v55 = vmul.f32 1.442695, %v310_v53 }
 0x390   :  { %2503 = vpow2.f32 %v320_v54  ;;  %v718_v54 = vsub.s32 1, %v2684_v34 }
 0x391   :  { %2505 = vpow2.f32 %v318_v55 }
 0x392   :  { %v719_v55 = vrot.slane %v2690_v36, %v718_v54 }
 0x39a   :  { %v2504_v56 = vpop.eup %2503 }
 0x39b   :  { %v2506_v57 = vpop.eup %2505  ;;  %v325_v58 = vsel %vm234_vm4, %v2504_v56, 0.0 }
 0x39c   :  { %326 = vadd.xlane.f32.xlu0 %v325_v58  ;;  %v322_v59 = vsel %vm234_vm4, %v2506_v57, 0.0 }
 0x39d   :  { %323 = vadd.xlane.f32.xlu1 %v322_v59 }
 0x3ae   :  { %419 = vrot.lane.b32.xlu1 %v220_v41, %s2579_s1 }
 0x3b2   :  { %2469 = vrot.lane.b32.xlu0 %v2696_v42, %s2580_s17 }
 0x3b6   :  { %421 = vrot.lane.b32.xlu0 %v225_v39, %s2579_s1  ;;  %v621_v39 = vld [vmem:[%s3028_s3] sm:$0xff] }
 0x3b7   :  { %v2351_v41 = vpack.c.bf16 %v622_v40, %v621_v39 }
 0x429   :  { %v327_v61 = vpop.xlane.xlu0 %326 }
 0x42a   :  { %2507 = vrcp.f32 %v327_v61  ;;  %v324_v62 = vpop.xlane.xlu1 %323 }
 0x42b   :  { %2509 = vrcp.f32 %v324_v62 }
 0x42d   :  { %v2470_v63 = vpop.permute.xlu0 %2469 }
 0x42e   :  { %v2472_v2 = vunpack.i.h.bf16 %v2470_v63  ;;  %v2471_v3 = vunpack.i.l.bf16 %v2470_v63  ;;  %v420_v10 = vpop.permute.xlu1 %419 }
 0x430   :  { %v2337_v4 = vpack.c.bf16 %v2472_v2, %v2471_v3  ;;  %v765_v3 = vld [vmem:[%s3029_s4 + $0x8] sm:$0xff] }
 0x431   :  { %v422_v11 = vpop.permute.xlu0 %421 }
 0x432   :  { %2338 = vmatprep.subr.bf16.mxu1 %v2337_v4 }
 0x433   :  { %2340 = vmatpush3.bf16.msra.mxu1 %v2337_v4 }
 0x434   :  { %v2508_v6 = vpop.eup %2507  ;;  %2343 = vmatprep.subr.msk.bf16.mxu1 %vm2704_vm5, %v2341_v5 }
 0x435   :  { %v2510_v7 = vpop.eup %2509  ;;  %v331_v9 = vmul.f32 %v2508_v6, %v2504_v56  ;;  %v767_v6 = vld [vmem:[%s3029_s4 + $0x18] sm:$0xff] }
 0x436   :  { %v330_v8 = vmul.f32 %v2510_v7, %v2506_v57 }
 0x438   :  { %2158 = vmatprep.mubr.msk.f32.mxu1 %vm234_vm4, %v330_v8  ;;  %v625_v8 = vld [vmem:[%s3028_s3 + $0x20] sm:$0xff] }
 0x439   :  { %2159 = vmatmul.mubr.msk.f32.vlgmr.msra.gmra.mrb[4].mxu1 %vm234_vm4, %v331_v9  ;;  %v626_v9 = vld [vmem:[%s3028_s3 + $0x28] sm:$0xff] }
 0x43a   :  { %2165 = vmatprep.mubr.msk.f32.mxu1 %vm234_vm4, %v420_v10  ;;  %v627_v10 = vld [vmem:[%s3028_s3 + $0x30] sm:$0xff] }
 0x43c   :  { %2346 = vmatpush3.bf16.xpose.msk.msra.mxu1 %vm2704_vm5, %v2341_v5  ;;  %v766_v5 = vld [vmem:[%s3029_s4 + $0x10] sm:$0xff] }
 0x43d   :  { %v2363_v7 = vpack.c.bf16 %v767_v6, %v766_v5 }
 0x443   :  { %2166 = vmatmul.mubr.msk.f32.vlgmr.msra.gmra.mrb[6].mxu1 %vm234_vm4, %v422_v11  ;;  %v2367_v11 = vpack.c.bf16 %v626_v9, %v625_v8 }
 0x50c   :  { %v2160_v12 = vpop.f32.mrb[4].mxu1 }
 0x50d   :  { %v410_v13 = vpop.f32.mrb[5].mxu1 }
 0x516   :  { %v2167_v14 = vpop.f32.mrb[6].mxu1 }
 0x517   :  { %v507_v15 = vadd.f32 %v2167_v14, %v2716_v48  ;;  %v501_v16 = vpop.f32.mrb[7].mxu1  ;;  %v629_v14 = vld [vmem:[%s3028_s3 + $0x40] sm:$0xff] }
 0x518   :  { %v502_v17 = vadd.f32 %v501_v16, %v2721_v49 }
 0x519   :  { %v512_v18 = vmul.f32 1.442695, %v507_v15  ;;  %v630_v15 = vld [vmem:[%s3028_s3 + $0x48] sm:$0xff] }
 0x51a   :  { %v510_v19 = vmul.f32 1.442695, %v502_v17  ;;  %v2375_v16 = vpack.c.bf16 %v630_v15, %v629_v14  ;;  %v1971_v14 = vld [vmem:[%s3027_s2 + $0x28] sm:$0xff] }
 0x51b   :  { %2511 = vpow2.f32 %v512_v18 }
 0x51c   :  { %2513 = vpow2.f32 %v510_v19 }
 0x525   :  { %v2512_v20 = vpop.eup %2511 }
 0x526   :  { %v2514_v21 = vpop.eup %2513  ;;  %v517_v22 = vsel %vm234_vm4, %v2512_v20, 0.0 }
 0x527   :  { %518 = vadd.xlane.f32.xlu0 %v517_v22  ;;  %v514_v23 = vsel %vm234_vm4, %v2514_v21, 0.0 }
 0x528   :  { %515 = vadd.xlane.f32.xlu1 %v514_v23 }
 0x53d   :  { %2479 = vrot.lane.b32.xlu0 %v2696_v42, %s2581_s18  ;;  %v623_v42 = vld [vmem:[%s3028_s3 + $0x10] sm:$0xff] }
 0x53e   :  { %v2355_v44 = vpack.c.bf16 %v624_v43, %v623_v42 }
 0x5b4   :  { %v519_v24 = vpop.xlane.xlu0 %518 }
 0x5b5   :  { %2515 = vrcp.f32 %v519_v24  ;;  %v516_v25 = vpop.xlane.xlu1 %515 }
 0x5b6   :  { %2517 = vrcp.f32 %v516_v25 }
 0x5b8   :  { %v2480_v26 = vpop.permute.xlu0 %2479 }
 0x5b9   :  { %v2482_v27 = vunpack.i.h.bf16 %v2480_v26  ;;  %v2481_v28 = vunpack.i.l.bf16 %v2480_v26 }
 0x5bb   :  { %v2347_v29 = vpack.c.bf16 %v2482_v27, %v2481_v28 }
 0x5bd   :  { %2348 = vmatprep.subr.bf16.mxu0 %v2347_v29 }
 0x5be   :  { %2350 = vmatpush3.bf16.msra.mxu0 %v2347_v29 }
 0x5bf   :  { %v2516_v30 = vpop.eup %2515  ;;  %2352 = vmatprep.subr.bf16.mxu0 %v2351_v41 }
 0x5c0   :  { %v2518_v31 = vpop.eup %2517  ;;  %v523_v38 = vmul.f32 %v2516_v30, %v2512_v20 }
 0x5c1   :  { %v522_v37 = vmul.f32 %v2518_v31, %v2514_v21  ;;  %v754_v31 = vsub.s32 4, %v2684_v34 }
 0x5c3   :  { %2172 = vmatprep.mubr.msk.f32.mxu0 %vm234_vm4, %v522_v37  ;;  %v760_v37 = vsub.s32 5, %v2684_v34  ;;  %v755_v39 = vrot.slane %v2690_v36, %v754_v31 }
 0x5c4   :  { %2173 = vmatmul.mubr.msk.f32.vlgmr.msra.gmra.mrb[2].mxu0 %vm234_vm4, %v523_v38 }
 0x5c5   :  { %2354 = vmatpush3.bf16.msra.mxu0 %v2351_v41  ;;  %v761_v42 = vrot.slane %v2690_v36, %v760_v37 }
 0x5c6   :  { %2356 = vmatprep.subr.bf16.mxu0 %v2355_v44 }
 0x5c9   :  { %2358 = vmatpush3.bf16.msra.mxu0 %v2355_v44 }
 0x5ca   :  { %2368 = vmatprep.subr.bf16.mxu0 %v2367_v11 }
 0x697   :  { %v2174_v45 = vpop.f32.mrb[2].mxu0 }
 0x698   :  { %v602_v47 = vpop.f32.mrb[3].mxu0 }
 0x699   :  { %613 = vrot.lane.b32.xlu1 %v602_v47, %s2582_s26 }
 0x69d   :  { %615 = vrot.lane.b32.xlu1 %v2174_v45, %s2582_s26 }
 0x70b   :  { %v614_v50 = vpop.permute.xlu1 %613 }
 0x70c   :  { %v619_v51 = vsel %vm234_vm4, %v410_v13, %v614_v50 }
 0x70d   :  { %2183 = vmatprep.mubr.msk.f32.mxu0 %vm146_vm3, %v619_v51 }
 0x70f   :  { %v616_v52 = vpop.permute.xlu1 %615 }
 0x710   :  { %v620_v53 = vsel %vm234_vm4, %v2160_v12, %v616_v52  ;;  %v628_v12 = vld [vmem:[%s3028_s3 + $0x38] sm:$0xff] }
 0x711   :  { %2184 = vmatmul.mubr.msk.f32.vlgmr.msra.gmra.mrb[4].mxu0 %vm146_vm3, %v620_v53  ;;  %v2371_v13 = vpack.c.bf16 %v628_v12, %v627_v10  ;;  %v631_v53 = vld [vmem:[%s3028_s3 + $0x50] sm:$0xff] }
 0x712   :  { %2370 = vmatpush3.bf16.msra.mxu0 %v2367_v11 }
 0x713   :  { %2372 = vmatprep.subr.bf16.mxu0 %v2371_v13 }
 0x716   :  { %2374 = vmatpush3.bf16.msra.mxu0 %v2371_v13  ;;  %v1970_v13 = vld [vmem:[%s3027_s2 + $0x20] sm:$0xff] }
 0x717   :  { %2376 = vmatprep.subr.bf16.mxu0 %v2375_v16  ;;  %v2383_v15 = vpack.c.bf16 %v1971_v14, %v1970_v13 }
 0x71a   :  { %2378 = vmatpush3.bf16.msra.mxu0 %v2375_v16  ;;  %v1972_v16 = vld [vmem:[%s3027_s2 + $0x30] sm:$0xff] }
 0x7e4   :  { %v2185_v56 = vpop.f32.mrb[4].mxu0 }
 0x7e5   :  { %v715_v57 = vadd.f32 %v2185_v56, %v2678_v33  ;;  %v705_v58 = vpop.f32.mrb[5].mxu0 }
 0x7e6   :  { %v714_v59 = vadd.f32 %v705_v58, %v2676_v32  ;;  %v764_v32 = vld [vmem:[%s3029_s4] sm:$0xff] }
 0x7e7   :  { %v2771_v60 = vadd.f32 %v719_v55, %v715_v57  ;;  %v2359_v4 = vpack.c.bf16 %v765_v3, %v764_v32  ;;  %v770_v57 = vsub.s32 2, %v2684_v34 }
 0x7e8   :  { %v720_v61 = vadd.f32 %v719_v55, %v714_v59  ;;  %v632_v55 = vld [vmem:[%s3028_s3 + $0x58] sm:$0xff] }
 0x7e9   :  { %v725_v62 = vsel %vm146_vm3, %v2771_v60, 0.0  ;;  %v731_v2 = vmul.f32 %v2771_v60, %v2771_v60  ;;  %2360 = vmatprep.subr.bf16.mxu1 %v2359_v4  ;;  %v2379_v56 = vpack.c.bf16 %v632_v55, %v631_v53  ;;  %v771_v58 = vrot.slane %v2690_v36, %v770_v57 }
 0x7ea   :  { %726 = vadd.xlane.f32.xlu1 %v725_v62  ;;  %v722_v63 = vsel %vm146_vm3, %v720_v61, 0.0  ;;  %v730_v0 = vmul.f32 %v720_v61, %v720_v61  ;;  %2362 = vmatpush3.bf16.msra.mxu1 %v2359_v4 }
 0x7eb   :  { %723 = vadd.xlane.f32.xlu0 %v722_v63  ;;  %v735_v33 = vsel %vm146_vm3, %v731_v2, 0.0  ;;  %2364 = vmatprep.subr.bf16.mxu1 %v2363_v7 }
 0x7ec   :  { %v732_v1 = vsel %vm146_vm3, %v730_v0, 0.0  ;;  %2380 = vmatprep.subr.bf16.mxu0 %v2379_v56 }
 0x7ed   :  { %2382 = vmatpush3.bf16.msra.mxu0 %v2379_v56 }
 0x7ee   :  { %2366 = vmatpush3.bf16.msra.mxu1 %v2363_v7 }
 0x7ef   :  { %733 = vadd.xlane.f32.xlu0 %v732_v1  ;;  %v940_v1 = vsub.s32 3, %v2684_v34  ;;  %2384 = vmatprep.subr.bf16.mxu1 %v2383_v15 }
 0x7f1   :  { %v941_v2 = vrot.slane %v2690_v36, %v940_v1 }
 0x7f3   :  { %736 = vadd.xlane.f32.xlu0 %v735_v33 }
 0x877   :  { %v727_v19 = vpop.xlane.xlu1 %726 }
 0x878   :  { %v724_v17 = vpop.xlane.xlu0 %723  ;;  %v729_v21 = vmul.f32 0.03125, %v727_v19 }
 0x879   :  { %v728_v18 = vmul.f32 0.03125, %v724_v17  ;;  %v1973_v17 = vld [vmem:[%s3027_s2 + $0x38] sm:$0xff] }
 0x87a   :  { %v743_v26 = vmul.f32 %v729_v21, %v729_v21  ;;  %v741_v43 = vsub.f32 %v2771_v60, %v729_v21 }
 0x87b   :  { %v742_v22 = vmul.f32 %v728_v18, %v728_v18  ;;  %v740_v38 = vsub.f32 %v720_v61, %v728_v18  ;;  %v2387_v18 = vpack.c.bf16 %v1973_v17, %v1972_v16 }
 0x87c   :  { %v734_v20 = vpop.xlane.xlu0 %733 }
 0x87d   :  { %v738_v23 = vmul.f32 0.03125, %v734_v20 }
 0x87f   :  { %v744_v24 = vsub.f32 %v738_v23, %v742_v22 }
 0x880   :  { %v737_v25 = vpop.xlane.xlu0 %736 }
 0x881   :  { %v746_v27 = vadd.f32 1e-05, %v744_v24  ;;  %v739_v28 = vmul.f32 0.03125, %v737_v25 }
 0x883   :  { %2519 = vrsqrt.f32 %v746_v27  ;;  %v745_v29 = vsub.f32 %v739_v28, %v743_v26 }
 0x885   :  { %v747_v30 = vadd.f32 1e-05, %v745_v29 }
 0x887   :  { %2521 = vrsqrt.f32 %v747_v30 }
 0x88d   :  { %v2520_v40 = vpop.eup %2519 }
 0x88e   :  { %v750_v41 = vmul.f32 %v2520_v40, %v740_v38  ;;  %v976_v40 = vsub.s32 6, %v2684_v34 }
 0x890   :  { %v756_v44 = vmul.f32 %v755_v39, %v750_v41  ;;  %v982_v41 = vsub.s32 7, %v2684_v34 }
 0x891   :  { %v2522_v45 = vpop.eup %2521 }
 0x892   :  { %v751_v47 = vmul.f32 %v2522_v45, %v741_v43  ;;  %v762_v50 = vadd.f32 %v761_v42, %v756_v44  ;;  %v977_v43 = vrot.slane %v2690_v36, %v976_v40 }
 0x894   :  { %v757_v51 = vmul.f32 %v755_v39, %v751_v47  ;;  %2194 = vmatprep.mubr.msk.f32.mxu1 %vm146_vm3, %v762_v50 }
 0x896   :  { %v763_v52 = vadd.f32 %v761_v42, %v757_v51 }
 0x898   :  { %2195 = vmatmul.mubr.msk.f32.vlgmr.msra.gmra.mrb[8].mxu1 %vm146_vm3, %v763_v52 }
 0x899   :  { %2386 = vmatpush3.bf16.msra.mxu1 %v2383_v15 }
 0x89a   :  { %2388 = vmatprep.subr.bf16.mxu1 %v2387_v18 }
 0x89d   :  { %2390 = vmatpush3.bf16.msra.mxu1 %v2387_v18 }
 0x96b   :  { %v2196_v59 = vpop.f32.mrb[8].mxu1 }
 0x96c   :  { %v850_v60 = vadd.f32 %v2196_v59, %v771_v58  ;;  %v844_v61 = vpop.f32.mrb[9].mxu1  ;;  %v2872_v59 = vld [vmem:[%s3030_s5 + $0x8] sm:$0xff] }
 0x96d   :  { %v845_v62 = vadd.f32 %v844_v61, %v771_v58 }
 0x96e   :  { %v854_v0 = vmax.f32 %v850_v60, 0.0 }
 0x96f   :  { %v853_v63 = vmax.f32 %v845_v62, 0.0 }
 0x971   :  { %2213 = vmatprep.mubr.msk.f32.mxu0 %vm55_vm0, %v853_v63 }
 0x972   :  { %2214 = vmatmul.mubr.msk.f32.vlgmr.msra.gmra.mrb[6].mxu0 %vm55_vm0, %v854_v0 }
 0xa45   :  { %v2215_v33 = vpop.f32.mrb[6].mxu0 }
 0xa46   :  { %v937_v32 = vadd.f32 %v2215_v33, %v763_v52  ;;  %v927_v3 = vpop.f32.mrb[7].mxu0  ;;  %v983_v52 = vrot.slane %v2690_v36, %v982_v41  ;;  %v996_v36 = vrot.slane %v2872_v59, %v144_v35 }
 0xa47   :  { %v936_v4 = vadd.f32 %v927_v3, %v762_v50 }
 0xa48   :  { %v943_v5 = vadd.f32 %v941_v2, %v937_v32 }
 0xa49   :  { %v942_v6 = vadd.f32 %v941_v2, %v936_v4 }
 0xa4a   :  { %v947_v7 = vsel %vm146_vm3, %v943_v5, 0.0  ;;  %v953_v8 = vmul.f32 %v943_v5, %v943_v5 }
 0xa4b   :  { %948 = vadd.xlane.f32.xlu0 %v947_v7  ;;  %v944_v9 = vsel %vm146_vm3, %v942_v6, 0.0  ;;  %v952_v10 = vmul.f32 %v942_v6, %v942_v6 }
 0xa4c   :  { %945 = vadd.xlane.f32.xlu1 %v944_v9  ;;  %v957_v11 = vsel %vm146_vm3, %v953_v8, 0.0 }
 0xa4d   :  { %v954_v12 = vsel %vm146_vm3, %v952_v10, 0.0 }
 0xa4f   :  { %958 = vadd.xlane.f32.xlu0 %v957_v11 }
 0xa50   :  { %955 = vadd.xlane.f32.xlu1 %v954_v12 }
 0xad8   :  { %v949_v19 = vpop.xlane.xlu0 %948 }
 0xad9   :  { %v951_v20 = vmul.f32 0.03125, %v949_v19  ;;  %v946_v21 = vpop.xlane.xlu1 %945 }
 0xada   :  { %v950_v22 = vmul.f32 0.03125, %v946_v21 }
 0xadb   :  { %v965_v24 = vmul.f32 %v951_v20, %v951_v20  ;;  %v963_v42 = vsub.f32 %v943_v5, %v951_v20 }
 0xadc   :  { %v959_v23 = vpop.xlane.xlu0 %958  ;;  %v964_v27 = vmul.f32 %v950_v22, %v950_v22  ;;  %v962_v45 = vsub.f32 %v942_v6, %v950_v22 }
 0xadd   :  { %v961_v25 = vmul.f32 0.03125, %v959_v23  ;;  %v956_v26 = vpop.xlane.xlu1 %955 }
 0xade   :  { %v960_v28 = vmul.f32 0.03125, %v956_v26 }
 0xadf   :  { %v967_v29 = vsub.f32 %v961_v25, %v965_v24 }
 0xae0   :  { %v966_v30 = vsub.f32 %v960_v28, %v964_v27 }
 0xae1   :  { %v969_v38 = vadd.f32 1e-05, %v967_v29 }
 0xae2   :  { %v968_v39 = vadd.f32 1e-05, %v966_v30 }
 0xae3   :  { %2523 = vrsqrt.f32 %v969_v38 }
 0xae4   :  { %2525 = vrsqrt.f32 %v968_v39 }
 0xaed   :  { %v2524_v44 = vpop.eup %2523 }
 0xaee   :  { %v2526_v47 = vpop.eup %2525  ;;  %v973_v50 = vmul.f32 %v2524_v44, %v963_v42 }
 0xaef   :  { %v972_v51 = vmul.f32 %v2526_v47, %v962_v45 }
 0xaf0   :  { %v979_v53 = vmul.f32 %v977_v43, %v973_v50 }
 0xaf1   :  { %v978_v55 = vmul.f32 %v977_v43, %v972_v51 }
 0xaf2   :  { %v2863_v58 = vadd.f32 %v983_v52, %v979_v53 }
 0xaf3   :  { %v2861_v56 = vadd.f32 %v983_v52, %v978_v55 }
 0xaf5   :  { %2224 = vmatprep.mubr.msk.f32.mxu1 %vm146_vm3, %v2861_v56 }
 0xaf6   :  { %2225 = vmatmul.mubr.msk.f32.vlgmr.msra.gmra.mrb[10].mxu1 %vm146_vm3, %v2863_v58 }
 0xbc9   :  { %v2226_v60 = vpop.f32.mrb[10].mxu1 }
 0xbca   :  { %v1075_v61 = vadd.f32 %v2226_v60, %v996_v36  ;;  %v1069_v62 = vpop.f32.mrb[11].mxu1 }
 0xbcb   :  { %v1070_v63 = vadd.f32 %v1069_v62, %v996_v36  ;;  %v1988_v62 = vld [vmem:[%s3028_s3 + $0x60] sm:$0xff] }
 0xbcd   :  { %2231 = vmatprep.mubr.msk.f32.mxu1 %vm234_vm4, %v1070_v63  ;;  %v2488_v0 = vpack.i.bf16 %v1075_v61, %v1070_v63 }
 0xbcf   :  { %2489 = vrot.lane.b32.xlu0 %v2488_v0, %s2578_s12  ;;  %2484 = vrot.lane.b32.xlu1 %v2488_v0, %s2577_s11 }
 0xbd3   :  { %1268 = vrot.lane.b32.xlu1 %v1070_v63, %s2579_s1  ;;  %v1989_v63 = vld [vmem:[%s3028_s3 + $0x68] sm:$0xff] }
 0xbd7   :  { %1270 = vrot.lane.b32.xlu1 %v1075_v61, %s2579_s1 }
 0xc41   :  { %v2490_v2 = vpop.permute.xlu0 %2489  ;;  %v2485_v33 = vpop.permute.xlu1 %2484 }
 0xc42   :  { %v2492_v32 = vunpack.i.h.bf16 %v2490_v2  ;;  %v2491_v3 = vunpack.i.l.bf16 %v2490_v2  ;;  %v2487_v35 = vunpack.i.h.bf16 %v2485_v33  ;;  %v2486_v4 = vunpack.i.l.bf16 %v2485_v33  ;;  %v1990_v2 = vld [vmem:[%s3028_s3 + $0x70] sm:$0xff]  ;;  %v1991_v33 = vld [vmem:[%s3028_s3 + $0x78] sm:$0xff] }
 0xc44   :  { %v2391_v5 = vpack.c.bf16 %v2487_v35, %v2486_v4  ;;  %v2401_v6 = vpack.c.bf16 %v2492_v32, %v2491_v3  ;;  %v2415_v32 = vpack.c.bf16 %v1991_v33, %v1990_v2  ;;  %v1611_v33 = vrot.slane %v2872_v59, %v760_v37 }
 0xc45   :  { %v1269_v7 = vpop.permute.xlu1 %1268 }
 0xc46   :  { %2393 = vmatprep.subr.msk.bf16.mxu1 %vm2704_vm5, %v2391_v5 }
 0xc47   :  { %2396 = vmatpush3.bf16.xpose.msk.msra.mxu1 %vm2704_vm5, %v2391_v5 }
 0xc48   :  { %2403 = vmatprep.subr.msk.bf16.mxu1 %vm2704_vm5, %v2401_v6 }
 0xc49   :  { %v1271_v8 = vpop.permute.xlu1 %1270 }
 0xc4e   :  { %2232 = vmatmul.mubr.msk.f32.vlgmr.msra.gmra.mrb[12].mxu1 %vm234_vm4, %v1075_v61 }
 0xc4f   :  { %2406 = vmatpush3.bf16.xpose.msk.msra.mxu1 %vm2704_vm5, %v2401_v6  ;;  %2245 = vmatprep.mubr.msk.f32.mxu1 %vm234_vm4, %v1269_v7 }
 0xc56   :  { %2246 = vmatmul.mubr.msk.f32.vlgmr.msra.gmra.mrb[14].mxu1 %vm234_vm4, %v1271_v8 }
 0xd21   :  { %v2233_v9 = vpop.f32.mrb[12].mxu1 }
 0xd22   :  { %v1164_v10 = vadd.f32 %v2233_v9, %v2716_v48  ;;  %v1158_v11 = vpop.f32.mrb[13].mxu1 }
 0xd23   :  { %v1159_v12 = vadd.f32 %v1158_v11, %v2721_v49 }
 0xd24   :  { %v1169_v13 = vmul.f32 1.442695, %v1164_v10  ;;  %v1569_v10 = vrot.slane %v2872_v59, %v718_v54 }
 0xd25   :  { %v1167_v14 = vmul.f32 1.442695, %v1159_v12 }
 0xd26   :  { %2527 = vpow2.f32 %v1169_v13 }
 0xd27   :  { %2529 = vpow2.f32 %v1167_v14 }
 0xd29   :  { %v2247_v15 = vpop.f32.mrb[14].mxu1 }
 0xd2a   :  { %v1356_v16 = vadd.f32 %v2247_v15, %v2716_v48  ;;  %v1350_v46 = vpop.f32.mrb[15].mxu1 }
 0xd2b   :  { %v1351_v17 = vadd.f32 %v1350_v46, %v2721_v49 }
 0xd2c   :  { %v1361_v18 = vmul.f32 1.442695, %v1356_v16 }
 0xd2d   :  { %v1359_v19 = vmul.f32 1.442695, %v1351_v17 }
 0xd2e   :  { %2531 = vpow2.f32 %v1361_v18 }
 0xd2f   :  { %2533 = vpow2.f32 %v1359_v19 }
 0xd30   :  { %v2528_v20 = vpop.eup %2527 }
 0xd31   :  { %v2530_v21 = vpop.eup %2529  ;;  %v1174_v22 = vsel %vm234_vm4, %v2528_v20, 0.0 }
 0xd32   :  { %1175 = vadd.xlane.f32.xlu1 %v1174_v22  ;;  %v1171_v23 = vsel %vm234_vm4, %v2530_v21, 0.0  ;;  %v2004_v22 = vld [vmem:[%s3029_s4 + $0x30] sm:$0xff] }
 0xd33   :  { %1172 = vadd.xlane.f32.xlu0 %v1171_v23  ;;  %v2005_v23 = vld [vmem:[%s3029_s4 + $0x38] sm:$0xff] }
 0xd38   :  { %v2532_v24 = vpop.eup %2531 }
 0xd39   :  { %v1366_v25 = vsel %vm234_vm4, %v2532_v24, 0.0  ;;  %v2534_v26 = vpop.eup %2533 }
 0xd3a   :  { %1367 = vadd.xlane.f32.xlu0 %v1366_v25  ;;  %v1363_v48 = vsel %vm234_vm4, %v2534_v26, 0.0  ;;  %v1992_v25 = vld [vmem:[%s3028_s3 + $0x80] sm:$0xff] }
 0xd3e   :  { %1364 = vadd.xlane.f32.xlu0 %v1363_v48  ;;  %v1994_v48 = vld [vmem:[%s3028_s3 + $0x90] sm:$0xff] }
 0xd43   :  { %2494 = vrot.lane.b32.xlu1 %v2488_v0, %s2580_s17 }
 0xd54   :  { %2499 = vrot.lane.b32.xlu0 %v2488_v0, %s2581_s18  ;;  %v2411_v0 = vpack.c.bf16 %v1989_v63, %v1988_v62  ;;  %v1605_v63 = vrot.slane %v2872_v59, %v754_v31  ;;  %v1998_v31 = vld [vmem:[%s3028_s3 + $0xb0] sm:$0xff] }
 0xdbf   :  { %v1176_v49 = vpop.xlane.xlu1 %1175 }
 0xdc0   :  { %2535 = vrcp.f32 %v1176_v49  ;;  %v1173_v27 = vpop.xlane.xlu0 %1172 }
 0xdc1   :  { %2537 = vrcp.f32 %v1173_v27  ;;  %v1995_v27 = vld [vmem:[%s3028_s3 + $0x98] sm:$0xff] }
 0xdc3   :  { %v2495_v28 = vpop.permute.xlu1 %2494 }
 0xdc4   :  { %v2497_v29 = vunpack.i.h.bf16 %v2495_v28  ;;  %v2496_v30 = vunpack.i.l.bf16 %v2495_v28  ;;  %v2431_v28 = vpack.c.bf16 %v1995_v27, %v1994_v48  ;;  %v1840_v48 = vld [vmem:[%s3031_s6 + $0x18] sm:$0xff] }
 0xdc6   :  { %v2397_v38 = vpack.c.bf16 %v2497_v29, %v2496_v30  ;;  %v1996_v29 = vld [vmem:[%s3028_s3 + $0xa0] sm:$0xff]  ;;  %v1997_v30 = vld [vmem:[%s3028_s3 + $0xa8] sm:$0xff] }
 0xdc7   :  { %v1368_v39 = vpop.xlane.xlu0 %1367 }
 0xdc8   :  { %2398 = vmatprep.subr.bf16.mxu0 %v2397_v38  ;;  %2539 = vrcp.f32 %v1368_v39 }
 0xdc9   :  { %2400 = vmatpush3.bf16.msra.mxu0 %v2397_v38  ;;  %v2435_v38 = vpack.c.bf16 %v1997_v30, %v1996_v29 }
 0xdca   :  { %v2536_v42 = vpop.eup %2535 }
 0xdcb   :  { %v2538_v43 = vpop.eup %2537  ;;  %v1365_v44 = vpop.xlane.xlu0 %1364  ;;  %v1180_v47 = vmul.f32 %v2536_v42, %v2528_v20 }
 0xdcc   :  { %2541 = vrcp.f32 %v1365_v44  ;;  %v1179_v45 = vmul.f32 %v2538_v43, %v2530_v21 }
 0xdce   :  { %2238 = vmatprep.mubr.msk.f32.mxu0 %vm234_vm4, %v1179_v45 }
 0xdcf   :  { %2239 = vmatmul.mubr.msk.f32.vlgmr.msra.gmra.mrb[8].mxu0 %vm234_vm4, %v1180_v47  ;;  %v2500_v50 = vpop.permute.xlu0 %2499 }
 0xdd0   :  { %v2502_v51 = vunpack.i.h.bf16 %v2500_v50  ;;  %v2501_v52 = vunpack.i.l.bf16 %v2500_v50 }
 0xdd2   :  { %v2407_v53 = vpack.c.bf16 %v2502_v51, %v2501_v52  ;;  %v2540_v55 = vpop.eup %2539 }
 0xdd3   :  { %v1372_v61 = vmul.f32 %v2540_v55, %v2532_v24  ;;  %v2423_v24 = vpack.c.bf16 %v2005_v23, %v2004_v22 }
 0xdd4   :  { %2408 = vmatprep.subr.bf16.mxu0 %v2407_v53 }
 0xdd5   :  { %2410 = vmatpush3.bf16.msra.mxu0 %v2407_v53 }
 0xdd6   :  { %v2542_v36 = vpop.eup %2541  ;;  %2412 = vmatprep.subr.bf16.mxu0 %v2411_v0 }
 0xdd7   :  { %v1371_v60 = vmul.f32 %v2542_v36, %v2534_v26  ;;  %v1993_v26 = vld [vmem:[%s3028_s3 + $0x88] sm:$0xff] }
 0xdd8   :  { %v2427_v49 = vpack.c.bf16 %v1993_v26, %v1992_v25  ;;  %v1839_v26 = vld [vmem:[%s3031_s6 + $0x10] sm:$0xff] }
 0xdd9   :  { %2252 = vmatprep.mubr.msk.f32.mxu0 %vm234_vm4, %v1371_v60 }
 0xdda   :  { %2253 = vmatmul.mubr.msk.f32.vlgmr.msra.gmra.mrb[10].mxu0 %vm234_vm4, %v1372_v61 }
 0xddb   :  { %2414 = vmatpush3.bf16.msra.mxu0 %v2411_v0 }
 0xddc   :  { %2416 = vmatprep.subr.bf16.mxu0 %v2415_v32 }
 0xddf   :  { %2418 = vmatpush3.bf16.msra.mxu0 %v2415_v32 }
 0xde0   :  { %2428 = vmatprep.subr.bf16.mxu0 %v2427_v49 }
 0xea2   :  { %v2240_v3 = vpop.f32.mrb[8].mxu0 }
 0xea3   :  { %v1259_v35 = vpop.f32.mrb[9].mxu0 }
 0xead   :  { %v2254_v4 = vpop.f32.mrb[10].mxu0 }
 0xeae   :  { %v1451_v5 = vpop.f32.mrb[11].mxu0 }
 0xeaf   :  { %1462 = vrot.lane.b32.xlu1 %v1451_v5, %s2582_s26 }
 0xeb3   :  { %1464 = vrot.lane.b32.xlu1 %v2254_v4, %s2582_s26 }
 0xf21   :  { %v1463_v6 = vpop.permute.xlu1 %1462 }
 0xf22   :  { %v1468_v7 = vsel %vm234_vm4, %v1259_v35, %v1463_v6 }
 0xf23   :  { %2263 = vmatprep.mubr.msk.f32.mxu0 %vm146_vm3, %v1468_v7 }
 0xf25   :  { %v1465_v8 = vpop.permute.xlu1 %1464 }
 0xf26   :  { %v1469_v9 = vsel %vm234_vm4, %v2240_v3, %v1465_v8  ;;  %v1999_v8 = vld [vmem:[%s3028_s3 + $0xb8] sm:$0xff] }
 0xf27   :  { %2264 = vmatmul.mubr.msk.f32.vlgmr.msra.gmra.mrb[12].mxu0 %vm146_vm3, %v1469_v9  ;;  %v2439_v37 = vpack.c.bf16 %v1999_v8, %v1998_v31  ;;  %v1622_v9 = vrot.slane %v2872_v59, %v770_v57 }
 0xf28   :  { %2430 = vmatpush3.bf16.msra.mxu0 %v2427_v49  ;;  %v2447_v49 = vpack.c.bf16 %v1840_v48, %v1839_v26 }
 0xf29   :  { %2432 = vmatprep.subr.bf16.mxu0 %v2431_v28 }
 0xf2c   :  { %2434 = vmatpush3.bf16.msra.mxu0 %v2431_v28 }
 0xf2d   :  { %2436 = vmatprep.subr.bf16.mxu0 %v2435_v38 }
 0xf30   :  { %2438 = vmatpush3.bf16.msra.mxu0 %v2435_v38 }
 0xf31   :  { %2440 = vmatprep.subr.bf16.mxu0 %v2439_v37 }
 0xf34   :  { %2442 = vmatpush3.bf16.msra.mxu0 %v2439_v37 }
 0xffa   :  { %v2265_v11 = vpop.f32.mrb[12].mxu0 }
 0xffb   :  { %v1565_v12 = vadd.f32 %v2265_v11, %v2863_v58  ;;  %v1555_v13 = vpop.f32.mrb[13].mxu0  ;;  %v2003_v58 = vld [vmem:[%s3029_s4 + $0x28] sm:$0xff] }
 0xffc   :  { %v1564_v14 = vadd.f32 %v1555_v13, %v2861_v56  ;;  %v2002_v56 = vld [vmem:[%s3029_s4 + $0x20] sm:$0xff] }
 0xffd   :  { %v1571_v15 = vadd.f32 %v1569_v10, %v1565_v12  ;;  %v2419_v21 = vpack.c.bf16 %v2003_v58, %v2002_v56 }
 0xffe   :  { %v1570_v16 = vadd.f32 %v1569_v10, %v1564_v14 }
 0xfff   :  { %v1575_v46 = vsel %vm146_vm3, %v1571_v15, 0.0  ;;  %v1581_v20 = vmul.f32 %v1571_v15, %v1571_v15  ;;  %2420 = vmatprep.subr.bf16.mxu1 %v2419_v21 }
0x1000   :  { %1576 = vadd.xlane.f32.xlu1 %v1575_v46  ;;  %v1572_v17 = vsel %vm146_vm3, %v1570_v16, 0.0  ;;  %v1580_v18 = vmul.f32 %v1570_v16, %v1570_v16  ;;  %2422 = vmatpush3.bf16.msra.mxu1 %v2419_v21 }
0x1001   :  { %1573 = vadd.xlane.f32.xlu0 %v1572_v17  ;;  %v1585_v54 = vsel %vm146_vm3, %v1581_v20, 0.0  ;;  %2424 = vmatprep.subr.bf16.mxu1 %v2423_v24 }
0x1002   :  { %v1582_v19 = vsel %vm146_vm3, %v1580_v18, 0.0 }
0x1004   :  { %2426 = vmatpush3.bf16.msra.mxu1 %v2423_v24  ;;  %v1838_v24 = vld [vmem:[%s3031_s6 + $0x8] sm:$0xff] }
0x1005   :  { %1583 = vadd.xlane.f32.xlu0 %v1582_v19 }
0x1009   :  { %1586 = vadd.xlane.f32.xlu0 %v1585_v54 }
0x108d   :  { %v1577_v43 = vpop.xlane.xlu1 %1576 }
0x108e   :  { %v1574_v39 = vpop.xlane.xlu0 %1573  ;;  %v1579_v45 = vmul.f32 0.03125, %v1577_v43 }
0x108f   :  { %v1578_v42 = vmul.f32 0.03125, %v1574_v39 }
0x1090   :  { %v1593_v53 = vmul.f32 %v1579_v45, %v1579_v45  ;;  %v1591_v32 = vsub.f32 %v1571_v15, %v1579_v45 }
0x1091   :  { %v1592_v47 = vmul.f32 %v1578_v42, %v1578_v42  ;;  %v1590_v62 = vsub.f32 %v1570_v16, %v1578_v42  ;;  %v1792_v16 = vrot.slane %v2872_v59, %v940_v1  ;;  %v1837_v1 = vld [vmem:[%s3031_s6] sm:$0xff] }
0x1092   :  { %v1584_v44 = vpop.xlane.xlu0 %1583  ;;  %v2443_v25 = vpack.c.bf16 %v1838_v24, %v1837_v1 }
0x1093   :  { %v1588_v50 = vmul.f32 0.03125, %v1584_v44 }
0x1094   :  { %2444 = vmatprep.subr.bf16.mxu1 %v2443_v25 }
0x1095   :  { %v1594_v51 = vsub.f32 %v1588_v50, %v1592_v47 }
0x1096   :  { %v1587_v52 = vpop.xlane.xlu0 %1586 }
0x1097   :  { %v1596_v55 = vadd.f32 1e-05, %v1594_v51  ;;  %v1589_v36 = vmul.f32 0.03125, %v1587_v52 }
0x1099   :  { %2543 = vrsqrt.f32 %v1596_v55  ;;  %v1595_v60 = vsub.f32 %v1589_v36, %v1593_v53  ;;  %v1828_v55 = vrot.slane %v2872_v59, %v976_v40  ;;  %v2010_v40 = vld [vmem:[%s3031_s6 + $0x20] ss:$0 sm:$0xff] }
0x109b   :  { %v1597_v61 = vadd.f32 1e-05, %v1595_v60 }
0x109d   :  { %2545 = vrsqrt.f32 %v1597_v61 }
0x10a3   :  { %v2544_v0 = vpop.eup %2543 }
0x10a4   :  { %v1600_v2 = vmul.f32 %v2544_v0, %v1590_v62  ;;  %v1834_v0 = vrot.slane %v2872_v59, %v982_v41 }
0x10a6   :  { %v1606_v3 = vmul.f32 %v1605_v63, %v1600_v2 }
0x10a7   :  { %v2546_v35 = vpop.eup %2545 }
0x10a8   :  { %v1601_v4 = vmul.f32 %v2546_v35, %v1591_v32  ;;  %v1612_v5 = vadd.f32 %v1611_v33, %v1606_v3 }
0x10aa   :  { %v1607_v6 = vmul.f32 %v1605_v63, %v1601_v4  ;;  %2274 = vmatprep.mubr.msk.f32.mxu1 %vm146_vm3, %v1612_v5 }
0x10ac   :  { %v1613_v7 = vadd.f32 %v1611_v33, %v1607_v6 }
0x10ae   :  { %2275 = vmatmul.mubr.msk.f32.vlgmr.msra.gmra.mrb[16].mxu1 %vm146_vm3, %v1613_v7 }
0x10af   :  { %2446 = vmatpush3.bf16.msra.mxu1 %v2443_v25 }
0x10b0   :  { %2448 = vmatprep.subr.bf16.mxu1 %v2447_v49 }
0x10b3   :  { %2450 = vmatpush3.bf16.msra.mxu1 %v2447_v49 }
0x1181   :  { %v2276_v10 = vpop.f32.mrb[16].mxu1 }
0x1182   :  { %v1701_v11 = vadd.f32 %v2276_v10, %v1622_v9  ;;  %v1695_v12 = vpop.f32.mrb[17].mxu1 }
0x1183   :  { %v1696_v13 = vadd.f32 %v1695_v12, %v1622_v9 }
0x1184   :  { %v1705_v15 = vmax.f32 %v1701_v11, 0.0 }
0x1185   :  { %v1704_v14 = vmax.f32 %v1696_v13, 0.0 }
0x1187   :  { %2293 = vmatprep.mubr.msk.f32.mxu0 %vm55_vm0, %v1704_v14 }
0x1188   :  { %2294 = vmatmul.mubr.msk.f32.vlgmr.msra.gmra.mrb[14].mxu0 %vm55_vm0, %v1705_v15 }
0x125b   :  { %v2295_v46 = vpop.f32.mrb[14].mxu0 }
0x125c   :  { %v1788_v17 = vadd.f32 %v2295_v46, %v1613_v7  ;;  %v1778_v18 = vpop.f32.mrb[15].mxu0 }
0x125d   :  { %v1787_v19 = vadd.f32 %v1778_v18, %v1612_v5 }
0x125e   :  { %v1794_v20 = vadd.f32 %v1792_v16, %v1788_v17 }
0x125f   :  { %v1793_v57 = vadd.f32 %v1792_v16, %v1787_v19 }
0x1260   :  { %v1798_v54 = vsel %vm146_vm3, %v1794_v20, 0.0  ;;  %v1804_v56 = vmul.f32 %v1794_v20, %v1794_v20 }
0x1261   :  { %1799 = vadd.xlane.f32.xlu0 %v1798_v54  ;;  %v1795_v58 = vsel %vm146_vm3, %v1793_v57, 0.0  ;;  %v1803_v21 = vmul.f32 %v1793_v57, %v1793_v57 }
0x1262   :  { %1796 = vadd.xlane.f32.xlu1 %v1795_v58  ;;  %v1808_v22 = vsel %vm146_vm3, %v1804_v56, 0.0 }
0x1263   :  { %v1805_v23 = vsel %vm146_vm3, %v1803_v21, 0.0 }
0x1265   :  { %1809 = vadd.xlane.f32.xlu0 %v1808_v22 }
0x1266   :  { %1806 = vadd.xlane.f32.xlu1 %v1805_v23 }
0x12ee   :  { %v1800_v27 = vpop.xlane.xlu0 %1799 }
0x12ef   :  { %v1802_v28 = vmul.f32 0.03125, %v1800_v27  ;;  %v1797_v29 = vpop.xlane.xlu1 %1796 }
0x12f0   :  { %v1801_v30 = vmul.f32 0.03125, %v1797_v29 }
0x12f1   :  { %v1816_v39 = vmul.f32 %v1802_v28, %v1802_v28  ;;  %v1814_v53 = vsub.f32 %v1794_v20, %v1802_v28 }
0x12f2   :  { %v1810_v38 = vpop.xlane.xlu0 %1809  ;;  %v1815_v44 = vmul.f32 %v1801_v30, %v1801_v30  ;;  %v1813_v60 = vsub.f32 %v1793_v57, %v1801_v30 }
0x12f3   :  { %v1812_v42 = vmul.f32 0.03125, %v1810_v38  ;;  %v1807_v43 = vpop.xlane.xlu1 %1806 }
0x12f4   :  { %v1811_v45 = vmul.f32 0.03125, %v1807_v43 }
0x12f5   :  { %v1818_v47 = vsub.f32 %v1812_v42, %v1816_v39 }
0x12f6   :  { %v1817_v50 = vsub.f32 %v1811_v45, %v1815_v44 }
0x12f7   :  { %v1820_v51 = vadd.f32 1e-05, %v1818_v47 }
0x12f8   :  { %v1819_v52 = vadd.f32 1e-05, %v1817_v50 }
0x12f9   :  { %2547 = vrsqrt.f32 %v1820_v51 }
0x12fa   :  { %2549 = vrsqrt.f32 %v1819_v52 }
0x1303   :  { %v2548_v36 = vpop.eup %2547 }
0x1304   :  { %v2550_v61 = vpop.eup %2549  ;;  %v1824_v62 = vmul.f32 %v2548_v36, %v1814_v53 }
0x1305   :  { %v1823_v63 = vmul.f32 %v2550_v61, %v1813_v60 }
0x1306   :  { %v1830_v2 = vmul.f32 %v1828_v55, %v1824_v62 }
0x1307   :  { %v1829_v33 = vmul.f32 %v1828_v55, %v1823_v63 }
0x1308   :  { %v1836_v3 = vadd.f32 %v1834_v0, %v1830_v2 }
0x1309   :  { %v1835_v32 = vadd.f32 %v1834_v0, %v1829_v33 }
0x130b   :  { %2304 = vmatprep.mubr.msk.f32.mxu1 %vm146_vm3, %v1835_v32 }
0x130c   :  { %2305 = vmatmul.mubr.msk.f32.vlgmr.msra.gmra.mrb[18].mxu1 %vm146_vm3, %v1836_v3 }
0x13df   :  { %v2306_v35 = vpop.f32.mrb[18].mxu1 }
0x13e0   :  { %v1924_v4 = vadd.f32 %v2306_v35, %v2010_v40  ;;  %v1918_v5 = vpop.f32.mrb[19].mxu1 }
0x13e1   :  { %v1919_v34 = vadd.f32 %v2010_v40, %v1918_v5 }
0x13e2   :  { %1928 = vst [vmem:[#allocation2 + $0x8] sm:$0xff] %v1924_v4 }
0x13e3   :  { %1927 = vst [vmem:[#allocation2] sm:$0xff] %v1919_v34 }
0x13e4   :  { %2562 = shalt.err (!%p2559_p4)
}
0x13e5   :  { %s2563_s6 = scalar_lea.hbm %s3032_s7, 256 }
0x13e6   :  { %p2564_p5 = scmp.ne.s32.totalorder %s3032_s7, %s2563_s6  ;;  %p2567_p6 = scmp.lt.u32.totalorder %s2563_s6, %s3032_s7 }
0x13e8   :  { %p2569_p7 = pnand %p2567_p6, %p2564_p5 }
0x13ea   :  { %2572 = shalt.err (!%p2569_p7)
}
0x13eb   :  { %s2584_s16 = smov 128   ;;  %s2585_s0 = smov 8  }
0x13ec   :  { %1940 = dma.vmem_to_hbm [thread:$0]  %s1935_s29, 256, %s3032_s7, [#allocation3], %s2584_s16, %s2584_s16, %s2585_s0  }
0x13ed   :  { %2573 = dma.done.wait [#allocation3], 256  }
0x13ee   :  { %2574 = vsyncadd [#allocation3], 4294967040 }
0x13ef   :  { %1944 = vsyncpa [#allocation3], 1 }

</bundles_post_ra>
